<compile_context>
chip_gen: v6e
topology: v6e:2x2x1
jax: 0.10.0
libtpu: 0.0.40
codegen_flags: <defaults>
</compile_context>

<pallas_src>
import math
import numpy as np
import jax
import jax.numpy as jnp
from jax.experimental import pallas as pl
from jax.experimental.pallas import tpu as pltpu


# ----------------------------------------------------------------------------
# Shared math
# ----------------------------------------------------------------------------
def _recip(x, approx, in_kernel):
    if in_kernel:
        return pl.reciprocal(x, approx=approx)
    return 1.0 / x


def _layer_norm(v, g, b, in_kernel, eps=1e-6):
    # torch: a_2 * (x - mean) / (std_unbiased + eps) + b_2
    mean = jnp.mean(v, axis=-1, keepdims=True)
    c = v - mean
    var = jnp.sum(c * c, axis=-1, keepdims=True) / (v.shape[-1] - 1)
    inv = _recip(jnp.sqrt(var) + eps, approx=False, in_kernel=in_kernel)
    return g * (c * inv) + b


# ----------------------------------------------------------------------------
# In-kernel blocked sublayers (batch block of TB sequences, head-major weights)
# ----------------------------------------------------------------------------
def _mha_blocked(xn, bias, wqkv, bqkv, wo, bo, num_heads):
    """xn: [TB,S,H] f32 post-LN; bias: [TB,S,S] additive mask; wqkv: [3,nh,H,dk] bf16
    (1/sqrt(dk) already folded into wq/bq); wo: [nh,dk,H] bf16."""
    TB, S, H = xn.shape
    dk = H // num_heads
    M = TB * S
    cdt = wqkv.dtype
    xm = xn.reshape(M, H).astype(cdt)                     # fold TB*S into the M dim

    acc = jnp.zeros((M, H), jnp.float32)
    # Unrolled per-head loop: only one head's [TB,S,S] score/prob block live at a time,
    # no lane-dim head slicing (weights are pre-split host-side), head-merge concat
    # disappears into the accumulated output-projection matmuls.
    for h in range(num_heads):
        q = jnp.dot(xm, wqkv[0, h], preferred_element_type=jnp.float32) + bqkv[0, h]
        k = jnp.dot(xm, wqkv[1, h], preferred_element_type=jnp.float32) + bqkv[1, h]
        v = jnp.dot(xm, wqkv[2, h], preferred_element_type=jnp.float32) + bqkv[2, h]
        qb = q.reshape(TB, S, dk).astype(cdt)
        kb = k.reshape(TB, S, dk).astype(cdt)
        vb = v.reshape(TB, S, dk).astype(cdt)

        s = jnp.einsum("bqd,bkd->bqk", qb, kb,
                       preferred_element_type=jnp.float32) + bias     # [TB,S,S]
        s = s - jnp.max(s, axis=-1, keepdims=True)
        p = jnp.exp(s)
        p = p * _recip(jnp.sum(p, axis=-1, keepdims=True), approx=True, in_kernel=True)

        ctx = jnp.einsum("bqk,bkd->bqd", p.astype(cdt), vb,
                         preferred_element_type=jnp.float32)          # [TB,S,dk]
        acc = acc + jnp.dot(ctx.reshape(M, dk).astype(cdt), wo[h],
                            preferred_element_type=jnp.float32)
    return (acc + bo).reshape(TB, S, H)


def _ffn_blocked(xn, w1, b1, w2, b2):
    TB, S, H = xn.shape
    M = TB * S
    cdt = w1.dtype
    h = jnp.dot(xn.reshape(M, H).astype(cdt), w1, preferred_element_type=jnp.float32) + b1
    h = jnp.maximum(h, 0.0)
    y = jnp.dot(h.astype(cdt), w2, preferred_element_type=jnp.float32) + b2
    return y.reshape(TB, S, H)


# ----------------------------------------------------------------------------
# Pallas kernel: grid = (batch_block, layer)
# ----------------------------------------------------------------------------
def _make_kernel(num_heads, tb):
    def kernel(lens_ref,                                   # scalar prefetch (SMEM)
               x_ref, ln_g_ref, ln_b_ref, wqkv_ref, bqkv_ref, wo_ref, bo_ref,
               w1_ref, b1_ref, w2_ref, b2_ref, lnf_g_ref, lnf_b_ref,
               o_ref, bias_ref):
        bi = pl.program_id(0)
        l = pl.program_id(1)
        nl = pl.num_programs(1)
        S = x_ref.shape[1]

        # Once per batch block: seed the carried activation (resident output block) and
        # build the additive attention bias from SMEM lengths (no HBM mask traffic).
        @pl.when(l == 0)
        def _():
            o_ref[...] = x_ref[...]
            row = jax.lax.broadcasted_iota(jnp.int32, (S, S), 0)
            col = jax.lax.broadcasted_iota(jnp.int32, (S, S), 1)
            for t in range(tb):                            # tb is a Python constant
                length = lens_ref[bi * tb + t]
                keep = jnp.logical_and(row < length, col < length)
                bias_ref[t] = jnp.where(keep, 0.0, -1e9).astype(jnp.float32)

        x = o_ref[...]                                     # [TB, S, H] f32 carry
        bias = bias_ref[...]                               # [TB, S, S] f32

        ln_g = ln_g_ref[0]                                 # [2, H]
        ln_b = ln_b_ref[0]
        wqkv = wqkv_ref[0]                                 # [3, nh, H, dk] bf16
        bqkv = bqkv_ref[0]                                 # [3, nh, 1, dk] f32
        wo = wo_ref[0]                                     # [nh, dk, H] bf16
        bo = bo_ref[0]                                     # [1, H] f32
        w1 = w1_ref[0]                                     # [H, F] bf16
        b1 = b1_ref[0]                                     # [1, F] f32
        w2 = w2_ref[0]                                     # [F, H] bf16
        b2 = b2_ref[0]                                     # [1, H] f32

        # sublayer 0: x = x + MHA(LN(x), mask)
        xn = _layer_norm(x, ln_g[0], ln_b[0], True)
        x = x + _mha_blocked(xn, bias, wqkv, bqkv, wo, bo, num_heads)
        # sublayer 1: x = x + FFN(LN(x))
        xn2 = _layer_norm(x, ln_g[1], ln_b[1], True)
        x = x + _ffn_blocked(xn2, w1, b1, w2, b2)

        # Single store path per layer: carry for l < L-1, final encoder LayerNorm on last.
        @pl.when(l < nl - 1)
        def _():
            o_ref[...] = x

        @pl.when(l == nl - 1)
        def _():
            o_ref[...] = _layer_norm(x, lnf_g_ref[0], lnf_b_ref[0], True).astype(o_ref.dtype)

    return kernel


# ----------------------------------------------------------------------------
# VMEM budgeting / batch-block selection
# ----------------------------------------------------------------------------
def _vmem_ceiling():
    phys = 64 << 20                                        # conservative default (v7x)
    try:
        info = pltpu.get_tpu_info()
        phys = int(getattr(info, "vmem_capacity_bytes", phys))
    except Exception:
        pass
    # leave ~1/4 headroom: ~48 MiB on v7x (64 MiB phys), ~96 MiB on v5e/v6e (128 MiB phys)
    return max(phys * 3 // 4, 16 << 20)


def _vmem_bytes_estimate(tb, S, H, F, nh):
    """Honest estimate: double-buffered streamed inputs + resident blocks + scratch
    + live in-kernel intermediates (per-head scores, q/k/v, ffn hidden)."""
    dk = H // nh
    M = tb * S
    wt = (4 * H * H + 2 * H * F) * 2                       # bf16 per-layer matrices
    small = (3 * H + H + 2 * 2 * H + F + H + 2 * H) * 4    # f32 biases / LN params
    streamed = 2 * (wt + small)                            # double-buffered pipeline
    act_blocks = 2 * 2 * (M * H * 4)                       # x block + output block, x2 buffers
    bias = tb * S * S * 4                                  # additive-mask scratch
    inter = (tb * S * S * (4 + 4 + 2)                      # s, p (f32) + p bf16 (one head live)
             + 3 * M * dk * (4 + 2)                        # q/k/v f32 + bf16 copies
             + 3 * M * H * 4 + M * H * 2                   # x / xn / acc f32 + xm bf16
             + M * F * (4 + 2))                            # ffn hidden f32 + bf16
    return streamed + act_blocks + bias + inter


def _choose_tb(B, S, H, F, nh, ceiling):
    best = 1
    for tb in range(1, B + 1):
        if B % tb:
            continue
        if B >= 2 and B // tb < 2:
            continue                                       # keep >=2 parallel blocks (v7x 2 TCs)
        if _vmem_bytes_estimate(tb, S, H, F, nh) <= ceiling:
            best = tb
    return best


# ----------------------------------------------------------------------------
# Host wrapper
# ----------------------------------------------------------------------------
def transformer_encoder_pallas(x, lengths, params, num_heads):
    B, S, H = x.shape
    L, _, F = params["w1"].shape
    nh = num_heads
    assert H % nh == 0
    dk = H // nh
    scale = 1.0 / math.sqrt(dk)

    wqkvo = params["wqkvo"]                                # [L, 4, H, H] stored [in, out]
    bqkvo = params["bqkvo"]                                # [L, 4, H]

    # Head-major weight layouts prepared once on the host (no in-kernel lane-dim split):
    #   wq/wk/wv -> [L, nh, H, dk]; wo -> [L, nh, dk, H]; 1/sqrt(dk) folded into wq, bq.
    def heads_out(w):                                      # [L, H, H] -> [L, nh, H, dk]
        return jnp.transpose(w.reshape(L, H, nh, dk), (0, 2, 1, 3))

    w_qkv = jnp.stack([heads_out(wqkvo[:, 0] * scale),
                       heads_out(wqkvo[:, 1]),
                       heads_out(wqkvo[:, 2])], axis=1).astype(jnp.bfloat16)  # [L,3,nh,H,dk]
    b_qkv = jnp.stack([bqkvo[:, 0] * scale, bqkvo[:, 1], bqkvo[:, 2]],
                      axis=1).reshape(L, 3, nh, 1, dk).astype(jnp.float32)    # [L,3,nh,1,dk]
    w_o = wqkvo[:, 3].reshape(L, nh, dk, H).astype(jnp.bfloat16)              # [L,nh,dk,H]
    b_o = bqkvo[:, 3].reshape(L, 1, H).astype(jnp.float32)
    w1 = params["w1"].astype(jnp.bfloat16)                 # [L, H, F]
    b1 = params["b1"][:, None, :]                          # [L, 1, F]
    w2 = params["w2"].astype(jnp.bfloat16)                 # [L, F, H]
    b2 = params["b2"][:, None, :]                          # [L, 1, H]
    lengths = jnp.asarray(lengths, dtype=jnp.int32)        # [B]

    ceiling = _vmem_ceiling()
    TB = _choose_tb(B, S, H, F, nh, ceiling)
    grid_b = B // TB
    vmem_limit = int(min(max(_vmem_bytes_estimate(TB, S, H, F, nh), 16 << 20), ceiling))

    in_specs = [
        pl.BlockSpec((TB, S, H), lambda bi, l, lens: (bi, 0, 0)),                # x
        pl.BlockSpec((1, 2, H), lambda bi, l, lens: (l, 0, 0)),                  # ln_g
        pl.BlockSpec((1, 2, H), lambda bi, l, lens: (l, 0, 0)),                  # ln_b
        pl.BlockSpec((1, 3, nh, H, dk), lambda bi, l, lens: (l, 0, 0, 0, 0)),    # w_qkv
        pl.BlockSpec((1, 3, nh, 1, dk), lambda bi, l, lens: (l, 0, 0, 0, 0)),    # b_qkv
        pl.BlockSpec((1, nh, dk, H), lambda bi, l, lens: (l, 0, 0, 0)),          # w_o
        pl.BlockSpec((1, 1, H), lambda bi, l, lens: (l, 0, 0)),                  # b_o
        pl.BlockSpec((1, H, F), lambda bi, l, lens: (l, 0, 0)),                  # w1
        pl.BlockSpec((1, 1, F), lambda bi, l, lens: (l, 0, 0)),                  # b1
        pl.BlockSpec((1, F, H), lambda bi, l, lens: (l, 0, 0)),                  # w2
        pl.BlockSpec((1, 1, H), lambda bi, l, lens: (l, 0, 0)),                  # b2
        pl.BlockSpec((1, H), lambda bi, l, lens: (0, 0)),                        # lnf_g
        pl.BlockSpec((1, H), lambda bi, l, lens: (0, 0)),                        # lnf_b
    ]

    # Advisory cost estimate so XLA schedules surrounding ops sensibly.
    matmul_flops_per_seq = 2 * S * (4 * H * H + 2 * H * F) + 4 * nh * S * S * dk
    per_layer_wt_bytes = (4 * H * H + 2 * H * F) * 2 + (3 * H + H + 4 * H + F + H) * 4
    cost = pl.CostEstimate(
        flops=int(B * L * matmul_flops_per_seq),
        transcendentals=int(B * L * nh * S * S),
        bytes_accessed=int(grid_b * L * per_layer_wt_bytes + 2 * B * S * H * 4 + B * 4))

    grid_spec = pltpu.PrefetchScalarGridSpec(
        num_scalar_prefetch=1,
        grid=(grid_b, L),                                  # layer axis innermost (carry axis)
        in_specs=in_specs,
        out_specs=pl.BlockSpec((TB, S, H), lambda bi, l, lens: (bi, 0, 0)),
        scratch_shapes=[pltpu.VMEM((TB, S, S), jnp.float32)])   # additive mask bias

    return pl.pallas_call(
        _make_kernel(nh, TB),
        out_shape=jax.ShapeDtypeStruct((B, S, H), jnp.float32),
        grid_spec=grid_spec,
        compiler_params=pltpu.CompilerParams(
            dimension_semantics=("parallel", "arbitrary"),
            vmem_limit_bytes=vmem_limit),
        cost_estimate=cost,
    )(lengths, x, params["ln_g"], params["ln_b"], w_qkv, b_qkv, w_o, b_o,
      w1, b1, w2, b2, params["lnf_g"], params["lnf_b"])


# ----------------------------------------------------------------------------
# Pure-JAX reference (f32 weights, exact divides) + deterministic parameter init
# ----------------------------------------------------------------------------
def _mha_ref(xn, keep, wq, wk, wv, wo, bq, bk, bv, bo, num_heads):
    S, H = xn.shape
    dk = H // num_heads
    q = jnp.dot(xn, wq) + bq
    k = jnp.dot(xn, wk) + bk
    v = jnp.dot(xn, wv) + bv
    qh = jnp.stack([q[:, h * dk:(h + 1) * dk] for h in range(num_heads)], 0)
    kh = jnp.stack([k[:, h * dk:(h + 1) * dk] for h in range(num_heads)], 0)
    vh = jnp.stack([v[:, h * dk:(h + 1) * dk] for h in range(num_heads)], 0)
    s = jnp.einsum("hqd,hkd->hqk", qh, kh) * (1.0 / math.sqrt(dk))
    s = jnp.where(keep[None, :, :], s, -1e9)
    s = s - jnp.max(s, axis=-1, keepdims=True)
    p = jnp.exp(s)
    p = p / jnp.sum(p, axis=-1, keepdims=True)
    ctx = jnp.einsum("hqk,hkd->hqd", p, vh)
    ctx2d = jnp.concatenate([ctx[h] for h in range(num_heads)], axis=-1)
    return jnp.dot(ctx2d, wo) + bo


def _encoder_layer_ref(x, keep, ln_g, ln_b, wqkvo, bqkvo, w1, b1, w2, b2, num_heads):
    xn = _layer_norm(x, ln_g[0], ln_b[0], False)
    x = x + _mha_ref(xn, keep, wqkvo[0], wqkvo[1], wqkvo[2], wqkvo[3],
                     bqkvo[0], bqkvo[1], bqkvo[2], bqkvo[3], num_heads)
    xn2 = _layer_norm(x, ln_g[1], ln_b[1], False)
    h = jnp.maximum(jnp.dot(xn2, w1) + b1, 0.0)
    return x + jnp.dot(h, w2) + b2


def transformer_encoder_ref(x, lengths, params, num_heads):
    B, S, H = x.shape
    L = params["w1"].shape[0]
    idx = jnp.arange(S)
    lens = jnp.asarray(lengths, jnp.int32)
    keep_all = ((idx[None, :, None] < lens[:, None, None]) &
                (idx[None, None, :] < lens[:, None, None]))          # [B, S, S]

    def one(xi, keep):
        for l in range(L):
            xi = _encoder_layer_ref(
                xi, keep,
                params["ln_g"][l], params["ln_b"][l],
                params["wqkvo"][l], params["bqkvo"][l],
                params["w1"][l], params["b1"][l],
                params["w2"][l], params["b2"][l], num_heads)
        return _layer_norm(xi, params["lnf_g"][0], params["lnf_b"][0], False)

    return jax.vmap(one)(x, keep_all)


def init_params(key, num_layers, hidden, ff):
    def xavier(k, shape, fan_in, fan_out):
        bound = math.sqrt(6.0 / (fan_in + fan_out))
        return jax.random.uniform(k, shape, jnp.float32, -bound, bound)

    ks = jax.random.split(key, 8)
    L, H, F = num_layers, hidden, ff
    return {
        "ln_g": jnp.ones((L, 2, H), jnp.float32),
        "ln_b": jnp.zeros((L, 2, H), jnp.float32),
        "wqkvo": xavier(ks[0], (L, 4, H, H), H, H),         # stored [in, out]
        "bqkvo": jax.random.uniform(ks[1], (L, 4, H), jnp.float32,
                                    -1.0 / math.sqrt(H), 1.0 / math.sqrt(H)),
        "w1": xavier(ks[2], (L, H, F), H, F),
        "b1": jax.random.uniform(ks[3], (L, F), jnp.float32,
                                 -1.0 / math.sqrt(H), 1.0 / math.sqrt(H)),
        "w2": xavier(ks[4], (L, F, H), F, H),
        "b2": jax.random.uniform(ks[5], (L, H), jnp.float32,
                                 -1.0 / math.sqrt(F), 1.0 / math.sqrt(F)),
        "lnf_g": jnp.ones((1, H), jnp.float32),
        "lnf_b": jnp.zeros((1, H), jnp.float32),
    }


# ----------------------------------------------------------------------------
if __name__ == "__main__":
    B, S, H = 2, 8, 32
    NUM_HEADS, NUM_LAYERS, FF = 4, 2, 4 * H
    lengths = [8, 5]

    key = jax.random.PRNGKey(0)
    k_x, k_p = jax.random.split(key)
    enc_memory = jax.random.normal(k_x, (B, S, H), jnp.float32)
    params = init_params(k_p, NUM_LAYERS, H, FF)
    lengths_arr = jnp.asarray(lengths, dtype=jnp.int32)

    # forward((enc_memory, lengths)) -> (new_enc_memory, lengths)
    new_enc_memory = transformer_encoder_pallas(enc_memory, lengths_arr, params, NUM_HEADS)
    new_enc_memory = jax.block_until_ready(new_enc_memory)

    ref = jax.block_until_ready(
        transformer_encoder_ref(enc_memory, lengths_arr, params, NUM_HEADS))

    out_np, ref_np = np.asarray(new_enc_memory), np.asarray(ref)
    assert out_np.shape == (B, S, H)
    assert np.all(np.isfinite(out_np))
    # Compare valid rows only (rows >= length are filler per module contract); loose tol
    # covers bf16 MXU operands + approx EUP reciprocal in the kernel.
    for i, ln in enumerate(lengths):
        np.testing.assert_allclose(out_np[i, :ln], ref_np[i, :ln], rtol=5e-2, atol=5e-2)

    print("KERNEL_OK")
</pallas_src>

<mosaic_0001>
module attributes {stable_mosaic.version = 11 : i64} {
  func.func @kernel(%arg0: i32, %arg1: i32, %arg2: memref<2xi32, #tpu.memory_space<smem>>, %arg3: memref<1x8x32xf32, #tpu.memory_space<vmem>>, %arg4: memref<1x2x32xf32, #tpu.memory_space<vmem>>, %arg5: memref<1x2x32xf32, #tpu.memory_space<vmem>>, %arg6: memref<1x3x4x32x8xbf16, #tpu.memory_space<vmem>>, %arg7: memref<1x3x4x1x8xf32, #tpu.memory_space<vmem>>, %arg8: memref<1x4x8x32xbf16, #tpu.memory_space<vmem>>, %arg9: memref<1x1x32xf32, #tpu.memory_space<vmem>>, %arg10: memref<1x32x128xbf16, #tpu.memory_space<vmem>>, %arg11: memref<1x1x128xf32, #tpu.memory_space<vmem>>, %arg12: memref<1x128x32xbf16, #tpu.memory_space<vmem>>, %arg13: memref<1x1x32xf32, #tpu.memory_space<vmem>>, %arg14: memref<1x32xf32, #tpu.memory_space<vmem>>, %arg15: memref<1x32xf32, #tpu.memory_space<vmem>>, %arg16: memref<1x8x32xf32, #tpu.memory_space<vmem>>, %arg17: memref<1x8x8xf32, #tpu.memory_space<vmem>>) attributes {dimension_semantics = [#tpu.dimension_semantics<parallel>, #tpu.dimension_semantics<arbitrary>], iteration_bounds = array<i64: 2, 2>, scalar_prefetch = 1 : i64, scratch_operands = 1 : i64, tpu.core_type = #tpu.core_type<tc>, window_params = [{transform_indices = @transform_0, window_bounds = array<i64: 1, 8, 32>}, {transform_indices = @transform_1, window_bounds = array<i64: 1, 2, 32>}, {transform_indices = @transform_2, window_bounds = array<i64: 1, 2, 32>}, {transform_indices = @transform_3, window_bounds = array<i64: 1, 3, 4, 32, 8>}, {transform_indices = @transform_4, window_bounds = array<i64: 1, 3, 4, 1, 8>}, {transform_indices = @transform_5, window_bounds = array<i64: 1, 4, 8, 32>}, {transform_indices = @transform_6, window_bounds = array<i64: 1, 1, 32>}, {transform_indices = @transform_7, window_bounds = array<i64: 1, 32, 128>}, {transform_indices = @transform_8, window_bounds = array<i64: 1, 1, 128>}, {transform_indices = @transform_9, window_bounds = array<i64: 1, 128, 32>}, {transform_indices = @transform_10, window_bounds = array<i64: 1, 1, 32>}, {pipeline_mode = #tpu.pipeline_mode<synchronous>, transform_indices = @transform_11, window_bounds = array<i64: 1, 32>}, {pipeline_mode = #tpu.pipeline_mode<synchronous>, transform_indices = @transform_12, window_bounds = array<i64: 1, 32>}, {transform_indices = @transform_13, window_bounds = array<i64: 1, 8, 32>}]} {
    %c0_i32 = arith.constant 0 : i32
    %0 = arith.cmpi eq, %arg1, %c0_i32 : i32
    %1 = arith.extui %0 : i1 to i32
    %c0_i32_0 = arith.constant 0 : i32
    %2 = arith.cmpi ne, %1, %c0_i32_0 : i32
    scf.if %2 {
      %c0_89 = arith.constant 0 : index
      %c0_90 = arith.constant 0 : index
      %c0_91 = arith.constant 0 : index
      %293 = vector.load %arg3[%c0_89, %c0_90, %c0_91] : memref<1x8x32xf32, #tpu.memory_space<vmem>>, vector<1x8x32xf32>
      %c0_92 = arith.constant 0 : index
      %c0_93 = arith.constant 0 : index
      %c0_94 = arith.constant 0 : index
      %294 = vector.load %arg16[%c0_92, %c0_93, %c0_94] : memref<1x8x32xf32, #tpu.memory_space<vmem>>, vector<1x8x32xf32>
      tpu.vector_store %arg16[%c0_92, %c0_93, %c0_94], %293 {strides = array<i32>} : memref<1x8x32xf32, #tpu.memory_space<vmem>>, vector<1x8x32xf32>,
      %295 = tpu.iota {dimensions = array<i32: 0>} : vector<8x8xi32>
      %296 = tpu.iota {dimensions = array<i32: 1>} : vector<8x8xi32>
      %c1_i32_95 = arith.constant 1 : i32
      %297 = arith.muli %arg0, %c1_i32_95 : i32
      %c0_i32_96 = arith.constant 0 : i32
      %298 = arith.addi %297, %c0_i32_96 : i32
      %299 = arith.index_cast %298 : i32 to index
      %300 = memref.load %arg2[%299] : memref<2xi32, #tpu.memory_space<smem>>
      %301 = vector.broadcast %300 : i32 to vector<8x8xi32>
      %302 = arith.cmpi slt, %295, %301 : vector<8x8xi32>
      %303 = vector.broadcast %300 : i32 to vector<8x8xi32>
      %304 = arith.cmpi slt, %296, %303 : vector<8x8xi32>
      %305 = arith.andi %302, %304 : vector<8x8xi1>
      %cst_97 = arith.constant 0.000000e+00 : f32
      %cst_98 = arith.constant -1.000000e+09 : f32
      %306 = vector.broadcast %cst_97 : f32 to vector<8x8xf32>
      %307 = vector.broadcast %cst_98 : f32 to vector<8x8xf32>
      %308 = arith.select %305, %306, %307 : vector<8x8xi1>, vector<8x8xf32>
      %c0_99 = arith.constant 0 : index
      %c0_100 = arith.constant 0 : index
      %c0_101 = arith.constant 0 : index
      %309 = vector.load %arg17[%c0_99, %c0_100, %c0_101] : memref<1x8x8xf32, #tpu.memory_space<vmem>>, vector<1x8x8xf32>
      %310 = vector.shape_cast %309 : vector<1x8x8xf32> to vector<8x8xf32>
      %311 = vector.shape_cast %308 : vector<8x8xf32> to vector<1x8x8xf32>
      tpu.vector_store %arg17[%c0_99, %c0_100, %c0_101], %311 {strides = array<i32>} : memref<1x8x8xf32, #tpu.memory_space<vmem>>, vector<1x8x8xf32>,
    } else {
    }
    %c0 = arith.constant 0 : index
    %c0_1 = arith.constant 0 : index
    %c0_2 = arith.constant 0 : index
    %3 = vector.load %arg16[%c0, %c0_1, %c0_2] : memref<1x8x32xf32, #tpu.memory_space<vmem>>, vector<1x8x32xf32>
    %c0_3 = arith.constant 0 : index
    %c0_4 = arith.constant 0 : index
    %c0_5 = arith.constant 0 : index
    %4 = vector.load %arg17[%c0_3, %c0_4, %c0_5] : memref<1x8x8xf32, #tpu.memory_space<vmem>>, vector<1x8x8xf32>
    %c0_6 = arith.constant 0 : index
    %c0_7 = arith.constant 0 : index
    %c0_8 = arith.constant 0 : index
    %5 = vector.load %arg4[%c0_6, %c0_7, %c0_8] : memref<1x2x32xf32, #tpu.memory_space<vmem>>, vector<1x2x32xf32>
    %6 = vector.shape_cast %5 : vector<1x2x32xf32> to vector<2x32xf32>
    %c0_9 = arith.constant 0 : index
    %c0_10 = arith.constant 0 : index
    %c0_11 = arith.constant 0 : index
    %7 = vector.load %arg5[%c0_9, %c0_10, %c0_11] : memref<1x2x32xf32, #tpu.memory_space<vmem>>, vector<1x2x32xf32>
    %8 = vector.shape_cast %7 : vector<1x2x32xf32> to vector<2x32xf32>
    %c0_12 = arith.constant 0 : index
    %c0_13 = arith.constant 0 : index
    %c0_14 = arith.constant 0 : index
    %c0_15 = arith.constant 0 : index
    %c0_16 = arith.constant 0 : index
    %9 = vector.load %arg6[%c0_12, %c0_13, %c0_14, %c0_15, %c0_16] : memref<1x3x4x32x8xbf16, #tpu.memory_space<vmem>>, vector<1x3x4x32x8xbf16>
    %10 = vector.shape_cast %9 : vector<1x3x4x32x8xbf16> to vector<3x4x32x8xbf16>
    %c0_17 = arith.constant 0 : index
    %c0_18 = arith.constant 0 : index
    %c0_19 = arith.constant 0 : index
    %c0_20 = arith.constant 0 : index
    %c0_21 = arith.constant 0 : index
    %11 = vector.load %arg7[%c0_17, %c0_18, %c0_19, %c0_20, %c0_21] : memref<1x3x4x1x8xf32, #tpu.memory_space<vmem>>, vector<1x3x4x1x8xf32>
    %12 = vector.shape_cast %11 : vector<1x3x4x1x8xf32> to vector<3x4x1x8xf32>
    %c0_22 = arith.constant 0 : index
    %c0_23 = arith.constant 0 : index
    %c0_24 = arith.constant 0 : index
    %c0_25 = arith.constant 0 : index
    %13 = vector.load %arg8[%c0_22, %c0_23, %c0_24, %c0_25] : memref<1x4x8x32xbf16, #tpu.memory_space<vmem>>, vector<1x4x8x32xbf16>
    %14 = vector.shape_cast %13 : vector<1x4x8x32xbf16> to vector<4x8x32xbf16>
    %c0_26 = arith.constant 0 : index
    %c0_27 = arith.constant 0 : index
    %c0_28 = arith.constant 0 : index
    %15 = vector.load %arg9[%c0_26, %c0_27, %c0_28] : memref<1x1x32xf32, #tpu.memory_space<vmem>>, vector<1x1x32xf32>
    %16 = vector.shape_cast %15 : vector<1x1x32xf32> to vector<1x32xf32>
    %c0_29 = arith.constant 0 : index
    %c0_30 = arith.constant 0 : index
    %c0_31 = arith.constant 0 : index
    %17 = vector.load %arg10[%c0_29, %c0_30, %c0_31] : memref<1x32x128xbf16, #tpu.memory_space<vmem>>, vector<1x32x128xbf16>
    %18 = vector.shape_cast %17 : vector<1x32x128xbf16> to vector<32x128xbf16>
    %c0_32 = arith.constant 0 : index
    %c0_33 = arith.constant 0 : index
    %c0_34 = arith.constant 0 : index
    %19 = vector.load %arg11[%c0_32, %c0_33, %c0_34] : memref<1x1x128xf32, #tpu.memory_space<vmem>>, vector<1x1x128xf32>
    %20 = vector.shape_cast %19 : vector<1x1x128xf32> to vector<1x128xf32>
    %c0_35 = arith.constant 0 : index
    %c0_36 = arith.constant 0 : index
    %c0_37 = arith.constant 0 : index
    %21 = vector.load %arg12[%c0_35, %c0_36, %c0_37] : memref<1x128x32xbf16, #tpu.memory_space<vmem>>, vector<1x128x32xbf16>
    %22 = vector.shape_cast %21 : vector<1x128x32xbf16> to vector<128x32xbf16>
    %c0_38 = arith.constant 0 : index
    %c0_39 = arith.constant 0 : index
    %c0_40 = arith.constant 0 : index
    %23 = vector.load %arg13[%c0_38, %c0_39, %c0_40] : memref<1x1x32xf32, #tpu.memory_space<vmem>>, vector<1x1x32xf32>
    %24 = vector.shape_cast %23 : vector<1x1x32xf32> to vector<1x32xf32>
    %25 = vector.extract_strided_slice %6 {offsets = [0, 0], sizes = [1, 32], strides = [1, 1]} : vector<2x32xf32> to vector<1x32xf32>
    %26 = vector.shape_cast %25 : vector<1x32xf32> to vector<32xf32>
    %27 = vector.extract_strided_slice %8 {offsets = [0, 0], sizes = [1, 32], strides = [1, 1]} : vector<2x32xf32> to vector<1x32xf32>
    %28 = vector.shape_cast %27 : vector<1x32xf32> to vector<32xf32>
    %cst = arith.constant dense<0.000000e+00> : vector<1x8xf32>
    %29 = vector.multi_reduction <add>, %3, %cst [2] : vector<1x8x32xf32> to vector<1x8xf32>
    %30 = vector.shape_cast %29 : vector<1x8xf32> to vector<1x8x1xf32>
    %cst_41 = arith.constant 3.200000e+01 : f32
    %31 = vector.broadcast %cst_41 : f32 to vector<1x8x1xf32>
    %32 = arith.divf %30, %31 : vector<1x8x1xf32>
    %33 = vector.broadcast %32 : vector<1x8x1xf32> to vector<1x8x32xf32>
    %34 = arith.subf %3, %33 : vector<1x8x32xf32>
    %35 = arith.mulf %34, %34 : vector<1x8x32xf32>
    %cst_42 = arith.constant dense<0.000000e+00> : vector<1x8xf32>
    %36 = vector.multi_reduction <add>, %35, %cst_42 [2] : vector<1x8x32xf32> to vector<1x8xf32>
    %37 = vector.shape_cast %36 : vector<1x8xf32> to vector<1x8x1xf32>
    %cst_43 = arith.constant 3.100000e+01 : f32
    %38 = vector.broadcast %cst_43 : f32 to vector<1x8x1xf32>
    %39 = arith.divf %37, %38 : vector<1x8x1xf32>
    %40 = math.sqrt %39 : vector<1x8x1xf32>
    %cst_44 = arith.constant 9.99999997E-7 : f32
    %41 = vector.broadcast %cst_44 : f32 to vector<1x8x1xf32>
    %42 = arith.addf %40, %41 : vector<1x8x1xf32>
    %43 = tpu.reciprocal %42 : vector<1x8x1xf32> -> vector<1x8x1xf32>
    %44 = vector.broadcast %43 : vector<1x8x1xf32> to vector<1x8x32xf32>
    %45 = arith.mulf %34, %44 : vector<1x8x32xf32>
    %46 = vector.shape_cast %26 : vector<32xf32> to vector<1x1x32xf32>
    %47 = vector.broadcast %46 : vector<1x1x32xf32> to vector<1x8x32xf32>
    %48 = arith.mulf %47, %45 : vector<1x8x32xf32>
    %49 = vector.shape_cast %28 : vector<32xf32> to vector<1x1x32xf32>
    %50 = vector.broadcast %49 : vector<1x1x32xf32> to vector<1x8x32xf32>
    %51 = arith.addf %48, %50 : vector<1x8x32xf32>
    %52 = vector.shape_cast %51 : vector<1x8x32xf32> to vector<8x32xf32>
    %53 = arith.truncf %52 : vector<8x32xf32> to vector<8x32xbf16>
    %cst_45 = arith.constant 0.000000e+00 : f32
    %54 = vector.broadcast %cst_45 : f32 to vector<8x32xf32>
    %55 = vector.extract_strided_slice %10 {offsets = [0, 0, 0, 0], sizes = [1, 1, 32, 8], strides = [1, 1, 1, 1]} : vector<3x4x32x8xbf16> to vector<1x1x32x8xbf16>
    %56 = vector.shape_cast %55 : vector<1x1x32x8xbf16> to vector<32x8xbf16>
    %cst_46 = arith.constant dense<0.000000e+00> : vector<8x8xf32>
    %57 = tpu.matmul %53, %56, %cst_46 {dimension_numbers = #tpu.dot_dimension_numbers<[1], [0], [0], [1], [0, 0, 1, 1], [], []>} : vector<8x32xbf16>, vector<32x8xbf16>, vector<8x8xf32> -> vector<8x8xf32>
    %58 = vector.extract_strided_slice %12 {offsets = [0, 0, 0, 0], sizes = [1, 1, 1, 8], strides = [1, 1, 1, 1]} : vector<3x4x1x8xf32> to vector<1x1x1x8xf32>
    %59 = vector.shape_cast %58 : vector<1x1x1x8xf32> to vector<1x8xf32>
    %60 = vector.broadcast %59 : vector<1x8xf32> to vector<8x8xf32>
    %61 = arith.addf %57, %60 : vector<8x8xf32>
    %62 = vector.extract_strided_slice %10 {offsets = [1, 0, 0, 0], sizes = [1, 1, 32, 8], strides = [1, 1, 1, 1]} : vector<3x4x32x8xbf16> to vector<1x1x32x8xbf16>
    %63 = vector.shape_cast %62 : vector<1x1x32x8xbf16> to vector<32x8xbf16>
    %cst_47 = arith.constant dense<0.000000e+00> : vector<8x8xf32>
    %64 = tpu.matmul %53, %63, %cst_47 {dimension_numbers = #tpu.dot_dimension_numbers<[1], [0], [0], [1], [0, 0, 1, 1], [], []>} : vector<8x32xbf16>, vector<32x8xbf16>, vector<8x8xf32> -> vector<8x8xf32>
    %65 = vector.extract_strided_slice %12 {offsets = [1, 0, 0, 0], sizes = [1, 1, 1, 8], strides = [1, 1, 1, 1]} : vector<3x4x1x8xf32> to vector<1x1x1x8xf32>
    %66 = vector.shape_cast %65 : vector<1x1x1x8xf32> to vector<1x8xf32>
    %67 = vector.broadcast %66 : vector<1x8xf32> to vector<8x8xf32>
    %68 = arith.addf %64, %67 : vector<8x8xf32>
    %69 = vector.extract_strided_slice %10 {offsets = [2, 0, 0, 0], sizes = [1, 1, 32, 8], strides = [1, 1, 1, 1]} : vector<3x4x32x8xbf16> to vector<1x1x32x8xbf16>
    %70 = vector.shape_cast %69 : vector<1x1x32x8xbf16> to vector<32x8xbf16>
    %cst_48 = arith.constant dense<0.000000e+00> : vector<8x8xf32>
    %71 = tpu.matmul %53, %70, %cst_48 {dimension_numbers = #tpu.dot_dimension_numbers<[1], [0], [0], [1], [0, 0, 1, 1], [], []>} : vector<8x32xbf16>, vector<32x8xbf16>, vector<8x8xf32> -> vector<8x8xf32>
    %72 = vector.extract_strided_slice %12 {offsets = [2, 0, 0, 0], sizes = [1, 1, 1, 8], strides = [1, 1, 1, 1]} : vector<3x4x1x8xf32> to vector<1x1x1x8xf32>
    %73 = vector.shape_cast %72 : vector<1x1x1x8xf32> to vector<1x8xf32>
    %74 = vector.broadcast %73 : vector<1x8xf32> to vector<8x8xf32>
    %75 = arith.addf %71, %74 : vector<8x8xf32>
    %76 = vector.shape_cast %61 : vector<8x8xf32> to vector<1x8x8xf32>
    %77 = arith.truncf %76 : vector<1x8x8xf32> to vector<1x8x8xbf16>
    %78 = vector.shape_cast %68 : vector<8x8xf32> to vector<1x8x8xf32>
    %79 = arith.truncf %78 : vector<1x8x8xf32> to vector<1x8x8xbf16>
    %80 = vector.shape_cast %75 : vector<8x8xf32> to vector<1x8x8xf32>
    %81 = arith.truncf %80 : vector<1x8x8xf32> to vector<1x8x8xbf16>
    "tpu.trace_start"() <{level = 10 : i32, message = "bqd,bkd->bqk"}> : () -> ()
    %cst_49 = arith.constant dense<0.000000e+00> : vector<1x8x8xf32>
    %82 = tpu.matmul %77, %79, %cst_49 {dimension_numbers = #tpu.dot_dimension_numbers<[2], [2], [1], [1], [0, 0, 0, 1, 1, 1], [0], [0]>} : vector<1x8x8xbf16>, vector<1x8x8xbf16>, vector<1x8x8xf32> -> vector<1x8x8xf32>
    "tpu.trace_stop"() : () -> ()
    %83 = arith.addf %82, %4 : vector<1x8x8xf32>
    %cst_50 = arith.constant dense<0xFF800000> : vector<1x8xf32>
    %84 = vector.multi_reduction <maximumf>, %83, %cst_50 [2] : vector<1x8x8xf32> to vector<1x8xf32>
    %85 = vector.shape_cast %84 : vector<1x8xf32> to vector<1x8x1xf32>
    %86 = vector.broadcast %85 : vector<1x8x1xf32> to vector<1x8x8xf32>
    %87 = arith.subf %83, %86 : vector<1x8x8xf32>
    %88 = math.exp %87 : vector<1x8x8xf32>
    %cst_51 = arith.constant dense<0.000000e+00> : vector<1x8xf32>
    %89 = vector.multi_reduction <add>, %88, %cst_51 [2] : vector<1x8x8xf32> to vector<1x8xf32>
    %90 = vector.shape_cast %89 : vector<1x8xf32> to vector<1x8x1xf32>
    %91 = tpu.reciprocal %90 {approx = true} : vector<1x8x1xf32> -> vector<1x8x1xf32>
    %92 = vector.broadcast %91 : vector<1x8x1xf32> to vector<1x8x8xf32>
    %93 = arith.mulf %88, %92 : vector<1x8x8xf32>
    %94 = arith.truncf %93 : vector<1x8x8xf32> to vector<1x8x8xbf16>
    "tpu.trace_start"() <{level = 10 : i32, message = "bqk,bkd->bqd"}> : () -> ()
    %cst_52 = arith.constant dense<0.000000e+00> : vector<1x8x8xf32>
    %95 = tpu.matmul %94, %81, %cst_52 {dimension_numbers = #tpu.dot_dimension_numbers<[2], [1], [1], [2], [0, 0, 0, 1, 1, 2], [0], [0]>} : vector<1x8x8xbf16>, vector<1x8x8xbf16>, vector<1x8x8xf32> -> vector<1x8x8xf32>
    "tpu.trace_stop"() : () -> ()
    %96 = vector.shape_cast %95 : vector<1x8x8xf32> to vector<8x8xf32>
    %97 = arith.truncf %96 : vector<8x8xf32> to vector<8x8xbf16>
    %98 = vector.extract_strided_slice %14 {offsets = [0, 0, 0], sizes = [1, 8, 32], strides = [1, 1, 1]} : vector<4x8x32xbf16> to vector<1x8x32xbf16>
    %99 = vector.shape_cast %98 : vector<1x8x32xbf16> to vector<8x32xbf16>
    %cst_53 = arith.constant dense<0.000000e+00> : vector<8x32xf32>
    %100 = tpu.matmul %97, %99, %cst_53 {dimension_numbers = #tpu.dot_dimension_numbers<[1], [0], [0], [1], [0, 0, 1, 1], [], []>} : vector<8x8xbf16>, vector<8x32xbf16>, vector<8x32xf32> -> vector<8x32xf32>
    %101 = arith.addf %54, %100 : vector<8x32xf32>
    %102 = vector.extract_strided_slice %10 {offsets = [0, 1, 0, 0], sizes = [1, 1, 32, 8], strides = [1, 1, 1, 1]} : vector<3x4x32x8xbf16> to vector<1x1x32x8xbf16>
    %103 = vector.shape_cast %102 : vector<1x1x32x8xbf16> to vector<32x8xbf16>
    %cst_54 = arith.constant dense<0.000000e+00> : vector<8x8xf32>
    %104 = tpu.matmul %53, %103, %cst_54 {dimension_numbers = #tpu.dot_dimension_numbers<[1], [0], [0], [1], [0, 0, 1, 1], [], []>} : vector<8x32xbf16>, vector<32x8xbf16>, vector<8x8xf32> -> vector<8x8xf32>
    %105 = vector.extract_strided_slice %12 {offsets = [0, 1, 0, 0], sizes = [1, 1, 1, 8], strides = [1, 1, 1, 1]} : vector<3x4x1x8xf32> to vector<1x1x1x8xf32>
    %106 = vector.shape_cast %105 : vector<1x1x1x8xf32> to vector<1x8xf32>
    %107 = vector.broadcast %106 : vector<1x8xf32> to vector<8x8xf32>
    %108 = arith.addf %104, %107 : vector<8x8xf32>
    %109 = vector.extract_strided_slice %10 {offsets = [1, 1, 0, 0], sizes = [1, 1, 32, 8], strides = [1, 1, 1, 1]} : vector<3x4x32x8xbf16> to vector<1x1x32x8xbf16>
    %110 = vector.shape_cast %109 : vector<1x1x32x8xbf16> to vector<32x8xbf16>
    %cst_55 = arith.constant dense<0.000000e+00> : vector<8x8xf32>
    %111 = tpu.matmul %53, %110, %cst_55 {dimension_numbers = #tpu.dot_dimension_numbers<[1], [0], [0], [1], [0, 0, 1, 1], [], []>} : vector<8x32xbf16>, vector<32x8xbf16>, vector<8x8xf32> -> vector<8x8xf32>
    %112 = vector.extract_strided_slice %12 {offsets = [1, 1, 0, 0], sizes = [1, 1, 1, 8], strides = [1, 1, 1, 1]} : vector<3x4x1x8xf32> to vector<1x1x1x8xf32>
    %113 = vector.shape_cast %112 : vector<1x1x1x8xf32> to vector<1x8xf32>
    %114 = vector.broadcast %113 : vector<1x8xf32> to vector<8x8xf32>
    %115 = arith.addf %111, %114 : vector<8x8xf32>
    %116 = vector.extract_strided_slice %10 {offsets = [2, 1, 0, 0], sizes = [1, 1, 32, 8], strides = [1, 1, 1, 1]} : vector<3x4x32x8xbf16> to vector<1x1x32x8xbf16>
    %117 = vector.shape_cast %116 : vector<1x1x32x8xbf16> to vector<32x8xbf16>
    %cst_56 = arith.constant dense<0.000000e+00> : vector<8x8xf32>
    %118 = tpu.matmul %53, %117, %cst_56 {dimension_numbers = #tpu.dot_dimension_numbers<[1], [0], [0], [1], [0, 0, 1, 1], [], []>} : vector<8x32xbf16>, vector<32x8xbf16>, vector<8x8xf32> -> vector<8x8xf32>
    %119 = vector.extract_strided_slice %12 {offsets = [2, 1, 0, 0], sizes = [1, 1, 1, 8], strides = [1, 1, 1, 1]} : vector<3x4x1x8xf32> to vector<1x1x1x8xf32>
    %120 = vector.shape_cast %119 : vector<1x1x1x8xf32> to vector<1x8xf32>
    %121 = vector.broadcast %120 : vector<1x8xf32> to vector<8x8xf32>
    %122 = arith.addf %118, %121 : vector<8x8xf32>
    %123 = vector.shape_cast %108 : vector<8x8xf32> to vector<1x8x8xf32>
    %124 = arith.truncf %123 : vector<1x8x8xf32> to vector<1x8x8xbf16>
    %125 = vector.shape_cast %115 : vector<8x8xf32> to vector<1x8x8xf32>
    %126 = arith.truncf %125 : vector<1x8x8xf32> to vector<1x8x8xbf16>
    %127 = vector.shape_cast %122 : vector<8x8xf32> to vector<1x8x8xf32>
    %128 = arith.truncf %127 : vector<1x8x8xf32> to vector<1x8x8xbf16>
    "tpu.trace_start"() <{level = 10 : i32, message = "bqd,bkd->bqk"}> : () -> ()
    %cst_57 = arith.constant dense<0.000000e+00> : vector<1x8x8xf32>
    %129 = tpu.matmul %124, %126, %cst_57 {dimension_numbers = #tpu.dot_dimension_numbers<[2], [2], [1], [1], [0, 0, 0, 1, 1, 1], [0], [0]>} : vector<1x8x8xbf16>, vector<1x8x8xbf16>, vector<1x8x8xf32> -> vector<1x8x8xf32>
    "tpu.trace_stop"() : () -> ()
    %130 = arith.addf %129, %4 : vector<1x8x8xf32>
    %cst_58 = arith.constant dense<0xFF800000> : vector<1x8xf32>
    %131 = vector.multi_reduction <maximumf>, %130, %cst_58 [2] : vector<1x8x8xf32> to vector<1x8xf32>
    %132 = vector.shape_cast %131 : vector<1x8xf32> to vector<1x8x1xf32>
    %133 = vector.broadcast %132 : vector<1x8x1xf32> to vector<1x8x8xf32>
    %134 = arith.subf %130, %133 : vector<1x8x8xf32>
    %135 = math.exp %134 : vector<1x8x8xf32>
    %cst_59 = arith.constant dense<0.000000e+00> : vector<1x8xf32>
    %136 = vector.multi_reduction <add>, %135, %cst_59 [2] : vector<1x8x8xf32> to vector<1x8xf32>
    %137 = vector.shape_cast %136 : vector<1x8xf32> to vector<1x8x1xf32>
    %138 = tpu.reciprocal %137 {approx = true} : vector<1x8x1xf32> -> vector<1x8x1xf32>
    %139 = vector.broadcast %138 : vector<1x8x1xf32> to vector<1x8x8xf32>
    %140 = arith.mulf %135, %139 : vector<1x8x8xf32>
    %141 = arith.truncf %140 : vector<1x8x8xf32> to vector<1x8x8xbf16>
    "tpu.trace_start"() <{level = 10 : i32, message = "bqk,bkd->bqd"}> : () -> ()
    %cst_60 = arith.constant dense<0.000000e+00> : vector<1x8x8xf32>
    %142 = tpu.matmul %141, %128, %cst_60 {dimension_numbers = #tpu.dot_dimension_numbers<[2], [1], [1], [2], [0, 0, 0, 1, 1, 2], [0], [0]>} : vector<1x8x8xbf16>, vector<1x8x8xbf16>, vector<1x8x8xf32> -> vector<1x8x8xf32>
    "tpu.trace_stop"() : () -> ()
    %143 = vector.shape_cast %142 : vector<1x8x8xf32> to vector<8x8xf32>
    %144 = arith.truncf %143 : vector<8x8xf32> to vector<8x8xbf16>
    %145 = vector.extract_strided_slice %14 {offsets = [1, 0, 0], sizes = [1, 8, 32], strides = [1, 1, 1]} : vector<4x8x32xbf16> to vector<1x8x32xbf16>
    %146 = vector.shape_cast %145 : vector<1x8x32xbf16> to vector<8x32xbf16>
    %cst_61 = arith.constant dense<0.000000e+00> : vector<8x32xf32>
    %147 = tpu.matmul %144, %146, %cst_61 {dimension_numbers = #tpu.dot_dimension_numbers<[1], [0], [0], [1], [0, 0, 1, 1], [], []>} : vector<8x8xbf16>, vector<8x32xbf16>, vector<8x32xf32> -> vector<8x32xf32>
    %148 = arith.addf %101, %147 : vector<8x32xf32>
    %149 = vector.extract_strided_slice %10 {offsets = [0, 2, 0, 0], sizes = [1, 1, 32, 8], strides = [1, 1, 1, 1]} : vector<3x4x32x8xbf16> to vector<1x1x32x8xbf16>
    %150 = vector.shape_cast %149 : vector<1x1x32x8xbf16> to vector<32x8xbf16>
    %cst_62 = arith.constant dense<0.000000e+00> : vector<8x8xf32>
    %151 = tpu.matmul %53, %150, %cst_62 {dimension_numbers = #tpu.dot_dimension_numbers<[1], [0], [0], [1], [0, 0, 1, 1], [], []>} : vector<8x32xbf16>, vector<32x8xbf16>, vector<8x8xf32> -> vector<8x8xf32>
    %152 = vector.extract_strided_slice %12 {offsets = [0, 2, 0, 0], sizes = [1, 1, 1, 8], strides = [1, 1, 1, 1]} : vector<3x4x1x8xf32> to vector<1x1x1x8xf32>
    %153 = vector.shape_cast %152 : vector<1x1x1x8xf32> to vector<1x8xf32>
    %154 = vector.broadcast %153 : vector<1x8xf32> to vector<8x8xf32>
    %155 = arith.addf %151, %154 : vector<8x8xf32>
    %156 = vector.extract_strided_slice %10 {offsets = [1, 2, 0, 0], sizes = [1, 1, 32, 8], strides = [1, 1, 1, 1]} : vector<3x4x32x8xbf16> to vector<1x1x32x8xbf16>
    %157 = vector.shape_cast %156 : vector<1x1x32x8xbf16> to vector<32x8xbf16>
    %cst_63 = arith.constant dense<0.000000e+00> : vector<8x8xf32>
    %158 = tpu.matmul %53, %157, %cst_63 {dimension_numbers = #tpu.dot_dimension_numbers<[1], [0], [0], [1], [0, 0, 1, 1], [], []>} : vector<8x32xbf16>, vector<32x8xbf16>, vector<8x8xf32> -> vector<8x8xf32>
    %159 = vector.extract_strided_slice %12 {offsets = [1, 2, 0, 0], sizes = [1, 1, 1, 8], strides = [1, 1, 1, 1]} : vector<3x4x1x8xf32> to vector<1x1x1x8xf32>
    %160 = vector.shape_cast %159 : vector<1x1x1x8xf32> to vector<1x8xf32>
    %161 = vector.broadcast %160 : vector<1x8xf32> to vector<8x8xf32>
    %162 = arith.addf %158, %161 : vector<8x8xf32>
    %163 = vector.extract_strided_slice %10 {offsets = [2, 2, 0, 0], sizes = [1, 1, 32, 8], strides = [1, 1, 1, 1]} : vector<3x4x32x8xbf16> to vector<1x1x32x8xbf16>
    %164 = vector.shape_cast %163 : vector<1x1x32x8xbf16> to vector<32x8xbf16>
    %cst_64 = arith.constant dense<0.000000e+00> : vector<8x8xf32>
    %165 = tpu.matmul %53, %164, %cst_64 {dimension_numbers = #tpu.dot_dimension_numbers<[1], [0], [0], [1], [0, 0, 1, 1], [], []>} : vector<8x32xbf16>, vector<32x8xbf16>, vector<8x8xf32> -> vector<8x8xf32>
    %166 = vector.extract_strided_slice %12 {offsets = [2, 2, 0, 0], sizes = [1, 1, 1, 8], strides = [1, 1, 1, 1]} : vector<3x4x1x8xf32> to vector<1x1x1x8xf32>
    %167 = vector.shape_cast %166 : vector<1x1x1x8xf32> to vector<1x8xf32>
    %168 = vector.broadcast %167 : vector<1x8xf32> to vector<8x8xf32>
    %169 = arith.addf %165, %168 : vector<8x8xf32>
    %170 = vector.shape_cast %155 : vector<8x8xf32> to vector<1x8x8xf32>
    %171 = arith.truncf %170 : vector<1x8x8xf32> to vector<1x8x8xbf16>
    %172 = vector.shape_cast %162 : vector<8x8xf32> to vector<1x8x8xf32>
    %173 = arith.truncf %172 : vector<1x8x8xf32> to vector<1x8x8xbf16>
    %174 = vector.shape_cast %169 : vector<8x8xf32> to vector<1x8x8xf32>
    %175 = arith.truncf %174 : vector<1x8x8xf32> to vector<1x8x8xbf16>
    "tpu.trace_start"() <{level = 10 : i32, message = "bqd,bkd->bqk"}> : () -> ()
    %cst_65 = arith.constant dense<0.000000e+00> : vector<1x8x8xf32>
    %176 = tpu.matmul %171, %173, %cst_65 {dimension_numbers = #tpu.dot_dimension_numbers<[2], [2], [1], [1], [0, 0, 0, 1, 1, 1], [0], [0]>} : vector<1x8x8xbf16>, vector<1x8x8xbf16>, vector<1x8x8xf32> -> vector<1x8x8xf32>
    "tpu.trace_stop"() : () -> ()
    %177 = arith.addf %176, %4 : vector<1x8x8xf32>
    %cst_66 = arith.constant dense<0xFF800000> : vector<1x8xf32>
    %178 = vector.multi_reduction <maximumf>, %177, %cst_66 [2] : vector<1x8x8xf32> to vector<1x8xf32>
    %179 = vector.shape_cast %178 : vector<1x8xf32> to vector<1x8x1xf32>
    %180 = vector.broadcast %179 : vector<1x8x1xf32> to vector<1x8x8xf32>
    %181 = arith.subf %177, %180 : vector<1x8x8xf32>
    %182 = math.exp %181 : vector<1x8x8xf32>
    %cst_67 = arith.constant dense<0.000000e+00> : vector<1x8xf32>
    %183 = vector.multi_reduction <add>, %182, %cst_67 [2] : vector<1x8x8xf32> to vector<1x8xf32>
    %184 = vector.shape_cast %183 : vector<1x8xf32> to vector<1x8x1xf32>
    %185 = tpu.reciprocal %184 {approx = true} : vector<1x8x1xf32> -> vector<1x8x1xf32>
    %186 = vector.broadcast %185 : vector<1x8x1xf32> to vector<1x8x8xf32>
    %187 = arith.mulf %182, %186 : vector<1x8x8xf32>
    %188 = arith.truncf %187 : vector<1x8x8xf32> to vector<1x8x8xbf16>
    "tpu.trace_start"() <{level = 10 : i32, message = "bqk,bkd->bqd"}> : () -> ()
    %cst_68 = arith.constant dense<0.000000e+00> : vector<1x8x8xf32>
    %189 = tpu.matmul %188, %175, %cst_68 {dimension_numbers = #tpu.dot_dimension_numbers<[2], [1], [1], [2], [0, 0, 0, 1, 1, 2], [0], [0]>} : vector<1x8x8xbf16>, vector<1x8x8xbf16>, vector<1x8x8xf32> -> vector<1x8x8xf32>
    "tpu.trace_stop"() : () -> ()
    %190 = vector.shape_cast %189 : vector<1x8x8xf32> to vector<8x8xf32>
    %191 = arith.truncf %190 : vector<8x8xf32> to vector<8x8xbf16>
    %192 = vector.extract_strided_slice %14 {offsets = [2, 0, 0], sizes = [1, 8, 32], strides = [1, 1, 1]} : vector<4x8x32xbf16> to vector<1x8x32xbf16>
    %193 = vector.shape_cast %192 : vector<1x8x32xbf16> to vector<8x32xbf16>
    %cst_69 = arith.constant dense<0.000000e+00> : vector<8x32xf32>
    %194 = tpu.matmul %191, %193, %cst_69 {dimension_numbers = #tpu.dot_dimension_numbers<[1], [0], [0], [1], [0, 0, 1, 1], [], []>} : vector<8x8xbf16>, vector<8x32xbf16>, vector<8x32xf32> -> vector<8x32xf32>
    %195 = arith.addf %148, %194 : vector<8x32xf32>
    %196 = vector.extract_strided_slice %10 {offsets = [0, 3, 0, 0], sizes = [1, 1, 32, 8], strides = [1, 1, 1, 1]} : vector<3x4x32x8xbf16> to vector<1x1x32x8xbf16>
    %197 = vector.shape_cast %196 : vector<1x1x32x8xbf16> to vector<32x8xbf16>
    %cst_70 = arith.constant dense<0.000000e+00> : vector<8x8xf32>
    %198 = tpu.matmul %53, %197, %cst_70 {dimension_numbers = #tpu.dot_dimension_numbers<[1], [0], [0], [1], [0, 0, 1, 1], [], []>} : vector<8x32xbf16>, vector<32x8xbf16>, vector<8x8xf32> -> vector<8x8xf32>
    %199 = vector.extract_strided_slice %12 {offsets = [0, 3, 0, 0], sizes = [1, 1, 1, 8], strides = [1, 1, 1, 1]} : vector<3x4x1x8xf32> to vector<1x1x1x8xf32>
    %200 = vector.shape_cast %199 : vector<1x1x1x8xf32> to vector<1x8xf32>
    %201 = vector.broadcast %200 : vector<1x8xf32> to vector<8x8xf32>
    %202 = arith.addf %198, %201 : vector<8x8xf32>
    %203 = vector.extract_strided_slice %10 {offsets = [1, 3, 0, 0], sizes = [1, 1, 32, 8], strides = [1, 1, 1, 1]} : vector<3x4x32x8xbf16> to vector<1x1x32x8xbf16>
    %204 = vector.shape_cast %203 : vector<1x1x32x8xbf16> to vector<32x8xbf16>
    %cst_71 = arith.constant dense<0.000000e+00> : vector<8x8xf32>
    %205 = tpu.matmul %53, %204, %cst_71 {dimension_numbers = #tpu.dot_dimension_numbers<[1], [0], [0], [1], [0, 0, 1, 1], [], []>} : vector<8x32xbf16>, vector<32x8xbf16>, vector<8x8xf32> -> vector<8x8xf32>
    %206 = vector.extract_strided_slice %12 {offsets = [1, 3, 0, 0], sizes = [1, 1, 1, 8], strides = [1, 1, 1, 1]} : vector<3x4x1x8xf32> to vector<1x1x1x8xf32>
    %207 = vector.shape_cast %206 : vector<1x1x1x8xf32> to vector<1x8xf32>
    %208 = vector.broadcast %207 : vector<1x8xf32> to vector<8x8xf32>
    %209 = arith.addf %205, %208 : vector<8x8xf32>
    %210 = vector.extract_strided_slice %10 {offsets = [2, 3, 0, 0], sizes = [1, 1, 32, 8], strides = [1, 1, 1, 1]} : vector<3x4x32x8xbf16> to vector<1x1x32x8xbf16>
    %211 = vector.shape_cast %210 : vector<1x1x32x8xbf16> to vector<32x8xbf16>
    %cst_72 = arith.constant dense<0.000000e+00> : vector<8x8xf32>
    %212 = tpu.matmul %53, %211, %cst_72 {dimension_numbers = #tpu.dot_dimension_numbers<[1], [0], [0], [1], [0, 0, 1, 1], [], []>} : vector<8x32xbf16>, vector<32x8xbf16>, vector<8x8xf32> -> vector<8x8xf32>
    %213 = vector.extract_strided_slice %12 {offsets = [2, 3, 0, 0], sizes = [1, 1, 1, 8], strides = [1, 1, 1, 1]} : vector<3x4x1x8xf32> to vector<1x1x1x8xf32>
    %214 = vector.shape_cast %213 : vector<1x1x1x8xf32> to vector<1x8xf32>
    %215 = vector.broadcast %214 : vector<1x8xf32> to vector<8x8xf32>
    %216 = arith.addf %212, %215 : vector<8x8xf32>
    %217 = vector.shape_cast %202 : vector<8x8xf32> to vector<1x8x8xf32>
    %218 = arith.truncf %217 : vector<1x8x8xf32> to vector<1x8x8xbf16>
    %219 = vector.shape_cast %209 : vector<8x8xf32> to vector<1x8x8xf32>
    %220 = arith.truncf %219 : vector<1x8x8xf32> to vector<1x8x8xbf16>
    %221 = vector.shape_cast %216 : vector<8x8xf32> to vector<1x8x8xf32>
    %222 = arith.truncf %221 : vector<1x8x8xf32> to vector<1x8x8xbf16>
    "tpu.trace_start"() <{level = 10 : i32, message = "bqd,bkd->bqk"}> : () -> ()
    %cst_73 = arith.constant dense<0.000000e+00> : vector<1x8x8xf32>
    %223 = tpu.matmul %218, %220, %cst_73 {dimension_numbers = #tpu.dot_dimension_numbers<[2], [2], [1], [1], [0, 0, 0, 1, 1, 1], [0], [0]>} : vector<1x8x8xbf16>, vector<1x8x8xbf16>, vector<1x8x8xf32> -> vector<1x8x8xf32>
    "tpu.trace_stop"() : () -> ()
    %224 = arith.addf %223, %4 : vector<1x8x8xf32>
    %cst_74 = arith.constant dense<0xFF800000> : vector<1x8xf32>
    %225 = vector.multi_reduction <maximumf>, %224, %cst_74 [2] : vector<1x8x8xf32> to vector<1x8xf32>
    %226 = vector.shape_cast %225 : vector<1x8xf32> to vector<1x8x1xf32>
    %227 = vector.broadcast %226 : vector<1x8x1xf32> to vector<1x8x8xf32>
    %228 = arith.subf %224, %227 : vector<1x8x8xf32>
    %229 = math.exp %228 : vector<1x8x8xf32>
    %cst_75 = arith.constant dense<0.000000e+00> : vector<1x8xf32>
    %230 = vector.multi_reduction <add>, %229, %cst_75 [2] : vector<1x8x8xf32> to vector<1x8xf32>
    %231 = vector.shape_cast %230 : vector<1x8xf32> to vector<1x8x1xf32>
    %232 = tpu.reciprocal %231 {approx = true} : vector<1x8x1xf32> -> vector<1x8x1xf32>
    %233 = vector.broadcast %232 : vector<1x8x1xf32> to vector<1x8x8xf32>
    %234 = arith.mulf %229, %233 : vector<1x8x8xf32>
    %235 = arith.truncf %234 : vector<1x8x8xf32> to vector<1x8x8xbf16>
    "tpu.trace_start"() <{level = 10 : i32, message = "bqk,bkd->bqd"}> : () -> ()
    %cst_76 = arith.constant dense<0.000000e+00> : vector<1x8x8xf32>
    %236 = tpu.matmul %235, %222, %cst_76 {dimension_numbers = #tpu.dot_dimension_numbers<[2], [1], [1], [2], [0, 0, 0, 1, 1, 2], [0], [0]>} : vector<1x8x8xbf16>, vector<1x8x8xbf16>, vector<1x8x8xf32> -> vector<1x8x8xf32>
    "tpu.trace_stop"() : () -> ()
    %237 = vector.shape_cast %236 : vector<1x8x8xf32> to vector<8x8xf32>
    %238 = arith.truncf %237 : vector<8x8xf32> to vector<8x8xbf16>
    %239 = vector.extract_strided_slice %14 {offsets = [3, 0, 0], sizes = [1, 8, 32], strides = [1, 1, 1]} : vector<4x8x32xbf16> to vector<1x8x32xbf16>
    %240 = vector.shape_cast %239 : vector<1x8x32xbf16> to vector<8x32xbf16>
    %cst_77 = arith.constant dense<0.000000e+00> : vector<8x32xf32>
    %241 = tpu.matmul %238, %240, %cst_77 {dimension_numbers = #tpu.dot_dimension_numbers<[1], [0], [0], [1], [0, 0, 1, 1], [], []>} : vector<8x8xbf16>, vector<8x32xbf16>, vector<8x32xf32> -> vector<8x32xf32>
    %242 = arith.addf %195, %241 : vector<8x32xf32>
    %243 = vector.broadcast %16 : vector<1x32xf32> to vector<8x32xf32>
    %244 = arith.addf %242, %243 : vector<8x32xf32>
    %245 = vector.shape_cast %244 : vector<8x32xf32> to vector<1x8x32xf32>
    %246 = arith.addf %3, %245 : vector<1x8x32xf32>
    %247 = vector.extract_strided_slice %6 {offsets = [1, 0], sizes = [1, 32], strides = [1, 1]} : vector<2x32xf32> to vector<1x32xf32>
    %248 = vector.shape_cast %247 : vector<1x32xf32> to vector<32xf32>
    %249 = vector.extract_strided_slice %8 {offsets = [1, 0], sizes = [1, 32], strides = [1, 1]} : vector<2x32xf32> to vector<1x32xf32>
    %250 = vector.shape_cast %249 : vector<1x32xf32> to vector<32xf32>
    %cst_78 = arith.constant dense<0.000000e+00> : vector<1x8xf32>
    %251 = vector.multi_reduction <add>, %246, %cst_78 [2] : vector<1x8x32xf32> to vector<1x8xf32>
    %252 = vector.shape_cast %251 : vector<1x8xf32> to vector<1x8x1xf32>
    %cst_79 = arith.constant 3.200000e+01 : f32
    %253 = vector.broadcast %cst_79 : f32 to vector<1x8x1xf32>
    %254 = arith.divf %252, %253 : vector<1x8x1xf32>
    %255 = vector.broadcast %254 : vector<1x8x1xf32> to vector<1x8x32xf32>
    %256 = arith.subf %246, %255 : vector<1x8x32xf32>
    %257 = arith.mulf %256, %256 : vector<1x8x32xf32>
    %cst_80 = arith.constant dense<0.000000e+00> : vector<1x8xf32>
    %258 = vector.multi_reduction <add>, %257, %cst_80 [2] : vector<1x8x32xf32> to vector<1x8xf32>
    %259 = vector.shape_cast %258 : vector<1x8xf32> to vector<1x8x1xf32>
    %cst_81 = arith.constant 3.100000e+01 : f32
    %260 = vector.broadcast %cst_81 : f32 to vector<1x8x1xf32>
    %261 = arith.divf %259, %260 : vector<1x8x1xf32>
    %262 = math.sqrt %261 : vector<1x8x1xf32>
    %cst_82 = arith.constant 9.99999997E-7 : f32
    %263 = vector.broadcast %cst_82 : f32 to vector<1x8x1xf32>
    %264 = arith.addf %262, %263 : vector<1x8x1xf32>
    %265 = tpu.reciprocal %264 : vector<1x8x1xf32> -> vector<1x8x1xf32>
    %266 = vector.broadcast %265 : vector<1x8x1xf32> to vector<1x8x32xf32>
    %267 = arith.mulf %256, %266 : vector<1x8x32xf32>
    %268 = vector.shape_cast %248 : vector<32xf32> to vector<1x1x32xf32>
    %269 = vector.broadcast %268 : vector<1x1x32xf32> to vector<1x8x32xf32>
    %270 = arith.mulf %269, %267 : vector<1x8x32xf32>
    %271 = vector.shape_cast %250 : vector<32xf32> to vector<1x1x32xf32>
    %272 = vector.broadcast %271 : vector<1x1x32xf32> to vector<1x8x32xf32>
    %273 = arith.addf %270, %272 : vector<1x8x32xf32>
    %274 = vector.shape_cast %273 : vector<1x8x32xf32> to vector<8x32xf32>
    %275 = arith.truncf %274 : vector<8x32xf32> to vector<8x32xbf16>
    %cst_83 = arith.constant dense<0.000000e+00> : vector<8x128xf32>
    %276 = tpu.matmul %275, %18, %cst_83 {dimension_numbers = #tpu.dot_dimension_numbers<[1], [0], [0], [1], [0, 0, 1, 1], [], []>} : vector<8x32xbf16>, vector<32x128xbf16>, vector<8x128xf32> -> vector<8x128xf32>
    %277 = vector.broadcast %20 : vector<1x128xf32> to vector<8x128xf32>
    %278 = arith.addf %276, %277 : vector<8x128xf32>
    %cst_84 = arith.constant 0.000000e+00 : f32
    %279 = vector.broadcast %cst_84 : f32 to vector<8x128xf32>
    %280 = arith.maximumf %278, %279 : vector<8x128xf32>
    %281 = arith.truncf %280 : vector<8x128xf32> to vector<8x128xbf16>
    %cst_85 = arith.constant dense<0.000000e+00> : vector<8x32xf32>
    %282 = tpu.matmul %281, %22, %cst_85 {dimension_numbers = #tpu.dot_dimension_numbers<[1], [0], [0], [1], [0, 0, 1, 1], [], []>} : vector<8x128xbf16>, vector<128x32xbf16>, vector<8x32xf32> -> vector<8x32xf32>
    %283 = vector.broadcast %24 : vector<1x32xf32> to vector<8x32xf32>
    %284 = arith.addf %282, %283 : vector<8x32xf32>
    %285 = vector.shape_cast %284 : vector<8x32xf32> to vector<1x8x32xf32>
    %286 = arith.addf %246, %285 : vector<1x8x32xf32>
    %c1_i32 = arith.constant 1 : i32
    %287 = arith.cmpi slt, %arg1, %c1_i32 : i32
    %288 = arith.extui %287 : i1 to i32
    %c0_i32_86 = arith.constant 0 : i32
    %289 = arith.cmpi ne, %288, %c0_i32_86 : i32
    scf.if %289 {
      %c0_89 = arith.constant 0 : index
      %c0_90 = arith.constant 0 : index
      %c0_91 = arith.constant 0 : index
      %293 = vector.load %arg16[%c0_89, %c0_90, %c0_91] : memref<1x8x32xf32, #tpu.memory_space<vmem>>, vector<1x8x32xf32>
      tpu.vector_store %arg16[%c0_89, %c0_90, %c0_91], %286 {strides = array<i32>} : memref<1x8x32xf32, #tpu.memory_space<vmem>>, vector<1x8x32xf32>,
    } else {
    }
    %c1_i32_87 = arith.constant 1 : i32
    %290 = arith.cmpi eq, %arg1, %c1_i32_87 : i32
    %291 = arith.extui %290 : i1 to i32
    %c0_i32_88 = arith.constant 0 : i32
    %292 = arith.cmpi ne, %291, %c0_i32_88 : i32
    scf.if %292 {
      %c0_89 = arith.constant 0 : index
      %c0_90 = arith.constant 0 : index
      %293 = vector.load %arg14[%c0_89, %c0_90] : memref<1x32xf32, #tpu.memory_space<vmem>>, vector<1x32xf32>
      %294 = vector.shape_cast %293 : vector<1x32xf32> to vector<32xf32>
      %c0_91 = arith.constant 0 : index
      %c0_92 = arith.constant 0 : index
      %295 = vector.load %arg15[%c0_91, %c0_92] : memref<1x32xf32, #tpu.memory_space<vmem>>, vector<1x32xf32>
      %296 = vector.shape_cast %295 : vector<1x32xf32> to vector<32xf32>
      %cst_93 = arith.constant dense<0.000000e+00> : vector<1x8xf32>
      %297 = vector.multi_reduction <add>, %286, %cst_93 [2] : vector<1x8x32xf32> to vector<1x8xf32>
      %298 = vector.shape_cast %297 : vector<1x8xf32> to vector<1x8x1xf32>
      %cst_94 = arith.constant 3.200000e+01 : f32
      %299 = vector.broadcast %cst_94 : f32 to vector<1x8x1xf32>
      %300 = arith.divf %298, %299 : vector<1x8x1xf32>
      %301 = vector.broadcast %300 : vector<1x8x1xf32> to vector<1x8x32xf32>
      %302 = arith.subf %286, %301 : vector<1x8x32xf32>
      %303 = arith.mulf %302, %302 : vector<1x8x32xf32>
      %cst_95 = arith.constant dense<0.000000e+00> : vector<1x8xf32>
      %304 = vector.multi_reduction <add>, %303, %cst_95 [2] : vector<1x8x32xf32> to vector<1x8xf32>
      %305 = vector.shape_cast %304 : vector<1x8xf32> to vector<1x8x1xf32>
      %cst_96 = arith.constant 3.100000e+01 : f32
      %306 = vector.broadcast %cst_96 : f32 to vector<1x8x1xf32>
      %307 = arith.divf %305, %306 : vector<1x8x1xf32>
      %308 = math.sqrt %307 : vector<1x8x1xf32>
      %cst_97 = arith.constant 9.99999997E-7 : f32
      %309 = vector.broadcast %cst_97 : f32 to vector<1x8x1xf32>
      %310 = arith.addf %308, %309 : vector<1x8x1xf32>
      %311 = tpu.reciprocal %310 : vector<1x8x1xf32> -> vector<1x8x1xf32>
      %312 = vector.broadcast %311 : vector<1x8x1xf32> to vector<1x8x32xf32>
      %313 = arith.mulf %302, %312 : vector<1x8x32xf32>
      %314 = vector.shape_cast %294 : vector<32xf32> to vector<1x1x32xf32>
      %315 = vector.broadcast %314 : vector<1x1x32xf32> to vector<1x8x32xf32>
      %316 = arith.mulf %315, %313 : vector<1x8x32xf32>
      %317 = vector.shape_cast %296 : vector<32xf32> to vector<1x1x32xf32>
      %318 = vector.broadcast %317 : vector<1x1x32xf32> to vector<1x8x32xf32>
      %319 = arith.addf %316, %318 : vector<1x8x32xf32>
      %c0_98 = arith.constant 0 : index
      %c0_99 = arith.constant 0 : index
      %c0_100 = arith.constant 0 : index
      %320 = vector.load %arg16[%c0_98, %c0_99, %c0_100] : memref<1x8x32xf32, #tpu.memory_space<vmem>>, vector<1x8x32xf32>
      tpu.vector_store %arg16[%c0_98, %c0_99, %c0_100], %319 {strides = array<i32>} : memref<1x8x32xf32, #tpu.memory_space<vmem>>, vector<1x8x32xf32>,
    } else {
    }
    return
  }
  func.func @transform_0(%arg0: i32, %arg1: i32, %arg2: memref<2xi32, #tpu.memory_space<smem>>) -> (i32, i32, i32) {
    %c0_i32 = arith.constant 0 : i32
    %c0_i32_0 = arith.constant 0 : i32
    %c0_i32_1 = arith.constant 0 : i32
    return %arg0, %c0_i32, %c0_i32_0 : i32, i32, i32
  }
  func.func @transform_1(%arg0: i32, %arg1: i32, %arg2: memref<2xi32, #tpu.memory_space<smem>>) -> (i32, i32, i32) {
    %c0_i32 = arith.constant 0 : i32
    %c0_i32_0 = arith.constant 0 : i32
    %c0_i32_1 = arith.constant 0 : i32
    return %arg1, %c0_i32, %c0_i32_0 : i32, i32, i32
  }
  func.func @transform_2(%arg0: i32, %arg1: i32, %arg2: memref<2xi32, #tpu.memory_space<smem>>) -> (i32, i32, i32) {
    %c0_i32 = arith.constant 0 : i32
    %c0_i32_0 = arith.constant 0 : i32
    %c0_i32_1 = arith.constant 0 : i32
    return %arg1, %c0_i32, %c0_i32_0 : i32, i32, i32
  }
  func.func @transform_3(%arg0: i32, %arg1: i32, %arg2: memref<2xi32, #tpu.memory_space<smem>>) -> (i32, i32, i32, i32, i32) {
    %c0_i32 = arith.constant 0 : i32
    %c0_i32_0 = arith.constant 0 : i32
    %c0_i32_1 = arith.constant 0 : i32
    %c0_i32_2 = arith.constant 0 : i32
    %c0_i32_3 = arith.constant 0 : i32
    return %arg1, %c0_i32, %c0_i32_0, %c0_i32_1, %c0_i32_2 : i32, i32, i32, i32, i32
  }
  func.func @transform_4(%arg0: i32, %arg1: i32, %arg2: memref<2xi32, #tpu.memory_space<smem>>) -> (i32, i32, i32, i32, i32) {
    %c0_i32 = arith.constant 0 : i32
    %c0_i32_0 = arith.constant 0 : i32
    %c0_i32_1 = arith.constant 0 : i32
    %c0_i32_2 = arith.constant 0 : i32
    %c0_i32_3 = arith.constant 0 : i32
    return %arg1, %c0_i32, %c0_i32_0, %c0_i32_1, %c0_i32_2 : i32, i32, i32, i32, i32
  }
  func.func @transform_5(%arg0: i32, %arg1: i32, %arg2: memref<2xi32, #tpu.memory_space<smem>>) -> (i32, i32, i32, i32) {
    %c0_i32 = arith.constant 0 : i32
    %c0_i32_0 = arith.constant 0 : i32
    %c0_i32_1 = arith.constant 0 : i32
    %c0_i32_2 = arith.constant 0 : i32
    return %arg1, %c0_i32, %c0_i32_0, %c0_i32_1 : i32, i32, i32, i32
  }
  func.func @transform_6(%arg0: i32, %arg1: i32, %arg2: memref<2xi32, #tpu.memory_space<smem>>) -> (i32, i32, i32) {
    %c0_i32 = arith.constant 0 : i32
    %c0_i32_0 = arith.constant 0 : i32
    %c0_i32_1 = arith.constant 0 : i32
    return %arg1, %c0_i32, %c0_i32_0 : i32, i32, i32
  }
  func.func @transform_7(%arg0: i32, %arg1: i32, %arg2: memref<2xi32, #tpu.memory_space<smem>>) -> (i32, i32, i32) {
    %c0_i32 = arith.constant 0 : i32
    %c0_i32_0 = arith.constant 0 : i32
    %c0_i32_1 = arith.constant 0 : i32
    return %arg1, %c0_i32, %c0_i32_0 : i32, i32, i32
  }
  func.func @transform_8(%arg0: i32, %arg1: i32, %arg2: memref<2xi32, #tpu.memory_space<smem>>) -> (i32, i32, i32) {
    %c0_i32 = arith.constant 0 : i32
    %c0_i32_0 = arith.constant 0 : i32
    %c0_i32_1 = arith.constant 0 : i32
    return %arg1, %c0_i32, %c0_i32_0 : i32, i32, i32
  }
  func.func @transform_9(%arg0: i32, %arg1: i32, %arg2: memref<2xi32, #tpu.memory_space<smem>>) -> (i32, i32, i32) {
    %c0_i32 = arith.constant 0 : i32
    %c0_i32_0 = arith.constant 0 : i32
    %c0_i32_1 = arith.constant 0 : i32
    return %arg1, %c0_i32, %c0_i32_0 : i32, i32, i32
  }
  func.func @transform_10(%arg0: i32, %arg1: i32, %arg2: memref<2xi32, #tpu.memory_space<smem>>) -> (i32, i32, i32) {
    %c0_i32 = arith.constant 0 : i32
    %c0_i32_0 = arith.constant 0 : i32
    %c0_i32_1 = arith.constant 0 : i32
    return %arg1, %c0_i32, %c0_i32_0 : i32, i32, i32
  }
  func.func @transform_11(%arg0: i32, %arg1: i32, %arg2: memref<2xi32, #tpu.memory_space<smem>>) -> (i32, i32) {
    %c0_i32 = arith.constant 0 : i32
    %c0_i32_0 = arith.constant 0 : i32
    %c0_i32_1 = arith.constant 0 : i32
    return %c0_i32, %c0_i32_0 : i32, i32
  }
  func.func @transform_12(%arg0: i32, %arg1: i32, %arg2: memref<2xi32, #tpu.memory_space<smem>>) -> (i32, i32) {
    %c0_i32 = arith.constant 0 : i32
    %c0_i32_0 = arith.constant 0 : i32
    %c0_i32_1 = arith.constant 0 : i32
    return %c0_i32, %c0_i32_0 : i32, i32
  }
  func.func @transform_13(%arg0: i32, %arg1: i32, %arg2: memref<2xi32, #tpu.memory_space<smem>>) -> (i32, i32, i32) {
    %c0_i32 = arith.constant 0 : i32
    %c0_i32_0 = arith.constant 0 : i32
    %c0_i32_1 = arith.constant 0 : i32
    return %arg0, %c0_i32, %c0_i32_0 : i32, i32, i32
  }
}

</mosaic_0001>

<bundles_post_ra>
// kernel: tpu_custom_call.1
= control target key start
LH: loop header
LB: loop body
LE: loop exit
PB: predicated region body
PF: predicated region fallthrough
CT: control target
= control target key end

     0   :  { %s3692_s0 = inlined_call_operand.vmem [shape: s32[2], index: 0, kind: input, shape index: {}]   ;;  %s3693_s1 = inlined_call_operand.vmem [shape: f32[2,8,32], index: 1, kind: input, shape index: {}]   ;;  %s3694_s2 = inlined_call_operand.vmem [shape: f32[2,2,32], index: 2, kind: input, shape index: {}]   ;;  %s3695_s3 = inlined_call_operand.vmem [shape: f32[2,2,32], index: 3, kind: input, shape index: {}]   ;;  %s3696_s4 = inlined_call_operand.vmem [shape: bf16[2,3,4,32,8], index: 4, kind: input, shape index: {}]   ;;  %s3697_s5 = inlined_call_operand.vmem [shape: f32[2,3,4,1,8], index: 5, kind: input, shape index: {}]   ;;  %s3698_s6 = inlined_call_operand.vmem [shape: bf16[2,4,8,32], index: 6, kind: input, shape index: {}]   ;;  %s3699_s7 = inlined_call_operand.vmem [shape: f32[2,1,32], index: 7, kind: input, shape index: {}]   ;;  %s3700_s8 = inlined_call_operand.vmem [shape: bf16[2,32,128], index: 8, kind: input, shape index: {}]   ;;  %s3701_s9 = inlined_call_operand.vmem [shape: f32[2,1,128], index: 9, kind: input, shape index: {}]   ;;  %s3702_s10 = inlined_call_operand.vmem [shape: bf16[2,128,32], index: 10, kind: input, shape index: {}]   ;;  %s3703_s11 = inlined_call_operand.vmem [shape: f32[2,1,32], index: 11, kind: input, shape index: {}]   ;;  %s3704_s12 = inlined_call_operand.vmem [shape: f32[1,32], index: 12, kind: input, shape index: {}]   ;;  %s3705_s13 = inlined_call_operand.vmem [shape: f32[1,32], index: 13, kind: input, shape index: {}]   ;;  %s3706_s14 = inlined_call_operand.hbm [shape: f32[2,8,32], index: 14, kind: output, shape index: {}]  }
   0x1   :  { %3720 = sst [smem:[#allocation21_spill]] %s3693_s1  ;;  %s19_s15 = sshll.u32 %s3692_s0, 4  ;;  %s20_s15 = int_to_ptr.vmem [resolvable:$true] %s19_s15 }
   0x2   :  { %3721 = sst [smem:[#allocation22_spill]] %s3694_s2  ;;  %s3039_s16 = scalar_lea.vmem %s20_s15, 16 }
   0x3   :  { %3722 = sst [smem:[#allocation23_spill]] %s3695_s3  ;;  %p3040_p0 = scmp.ne.s32.totalorder %s20_s15, %s3039_s16 }
   0x4   :  { %3723 = sst [smem:[#allocation24_spill]] %s3696_s4  ;;  %p3044_p1 = scmp.lt.s32.totalorder %s20_s15, %s20_s15 }
   0x5   :  { %3724 = sst [smem:[#allocation25_spill]] %s3698_s6  ;;  %p3045_p2 = scmp.lt.s32.totalorder %s3039_s16, %s3039_s16 }
   0x6   :  { %3725 = sst [smem:[#allocation26_spill]] %s3704_s12 }
   0x7   :  { %3726 = sst [smem:[#allocation27_spill]] %s3705_s13  ;;  %p3046_p3 = por %p3045_p2, %p3044_p1 }
   0x8   :  { %3727 = sst [smem:[#allocation28_spill]] %s3706_s14 }
   0x9   :  { %p3047_p4 = pnand %p3046_p3, %p3040_p0 }
   0xb   :  { %3050 = shalt.err (!%p3047_p4)  }
   0xc   :  { %s3147_s17 = smov [#allocation4]  }
   0xd   :  { %22 = dma.vmem_to_smem %s20_s15, 16, %s3147_s17, [#allocation3] }
   0xe   :  { %3109 = dma.done.wait [#allocation3], 16 }
   0xf   :  { %3110 = vsyncadd [#allocation3], 4294967280 }
  0x10   :  { %24 = sfence }
  0x11   :  { %25 = vsyncpa [#allocation6], 0 }
  0x12   :  { %27 = vsyncpa [#allocation6 + $0x1], 0  ;;  %s3230_s18 = smov 0   ;;  %s3232_s19 = smov 0  }
  0x13   :  { %s3234_s0 = smov 0   ;;  %s3236_s20 = smov 0  }
  0x14   :  { %s3238_s21 = smov 0   ;;  %s3240_s22 = smov 0  }
  0x15   :  { %s3242_s23 = smov 0   ;;  %s3244_s24 = smov 0  }
  0x16 LB: > { %3728 = sst [smem:[#allocation9_spill]] %s3117_s18  ;;  %s2530_s25 = sadd.s32 4294967295, %s3145_s24   ;;  %s3145_s24 = sphi %s3244_s24, %s33_s24   ;;  %s3141_s23 = sphi %s3242_s23, %s3765_s23   ;;  %s3137_s22 = sphi %s3240_s22, %s3764_s22   ;;  %s3133_s21 = sphi %s3238_s21, %s3763_s21   ;;  %s3129_s20 = sphi %s3236_s20, %s3762_s20   ;;  %s3125_s0 = sphi %s3234_s0, %s3761_s0   ;;  %s3121_s19 = sphi %s3232_s19, %s3760_s19   ;;  %s3117_s18 = sphi %s3230_s18, %s3759_s18  }
  0x17   : > { %3729 = sst [smem:[#allocation10_spill]] %s3121_s19  ;;  %s2531_s26 = sadd.s32 4294967294, %s3145_s24  }
  0x18   : > { %3730 = sst [smem:[#allocation11_spill]] %s3125_s0  ;;  %s42_s27 = sadd.s32 1, %s3137_s22 }
  0x19   : > { %3731 = sst [smem:[#allocation12_spill]] %s3137_s22  ;;  %p43_p5 = scmp.ge.s32.totalorder %s42_s27, 2 }
  0x1a   : > { %3732 = sst [smem:[#allocation13_spill]] %s3141_s23  ;;  %s45_s28 = sadd.s32 1, %s3141_s23 }
  0x1b   : > { %3733 = sst [smem:[#allocation14_spill]] %s3145_s24  ;;  %p390_p6 = scmp.ne.s32.totalorder %s3125_s0, %s3121_s19 }
  0x1c   : > { %p391_p7 = scmp.eq.s32.totalorder %s2530_s25, 3  ;;  %s3767_s27 = smov (%p43_p5, %s42_s27), 0 }
  0x1d   : > { %3734 = sst [smem:[#allocation15_spill]] %s3767_s27  ;;  %s3769_s28 = smov (!%p43_p5, %s45_s28), %s3141_s23 }
  0x1e   : > { %p3279_p8 = por %p391_p7, %p390_p6  ;;  %p396_p9 = scmp.ne.s32.totalorder %s3121_s19, %s3117_s18 }
  0x1f   : > { %p47_p10 = scmp.ge.s32.totalorder %s3769_s28, 2  ;;  %p397_p11 = scmp.eq.s32.totalorder %s2531_s26, 3 }
  0x20   : > { %s3735_s29 = scalar_select %p3279_p8, 1, 0 }
  0x21   : > { %p2534_p12 = scmp.ge.s32.totalorder %s3145_s24, 1  ;;  %p499_p13 = scmp.lt.s32.totalorder %s3145_s24, 5 }
  0x22   : > { %3736 = sst [smem:[#allocation16_spill]] %s3735_s29  ;;  %s3771_s28 = smov (%p47_p10, %s3769_s28), 0 }
  0x23   : > { %3737 = sst [smem:[#allocation17_spill]] %s3771_s28  ;;  %p3289_p0 = por %p397_p11, %p396_p9 }
  0x24   : > { %p500_p1 = pnand %p2534_p12, %p499_p13  ;;  %s377_s15 = ssub.s32 %s3141_s23, %s3771_s28 }
  0x25   : > { %s3738_s30 = scalar_select %p3289_p0, 1, 0 }
  0x26   : > { %s380_s16 = sadd.s32 1, %s3125_s0  ;;  %p378_p2 = scmp.eq.s32.totalorder %s377_s15, 0 }
  0x27   : > { %3739 = sst [smem:[#allocation18_spill]] %s3738_s30  ;;  %503 = sbr.rel (%p500_p1) target bundleno = 5150 (0x141e), region = 72 }
  0x28   : > { %s3297_s17 = scalar_select %p378_p2, %s3125_s0, %s380_s16  }
  0x2a   : > { %3740 = sst [smem:[#allocation19_spill]] %s3297_s17 }
  0x2c   : > { %s3711_s25 = sand.u32 1, %s3121_s19   ;;  %p583_p3 = scmp.lt.s32.totalorder %s3133_s21, 1 }
  0x2d   : > { %s2535_s26 = sshll.u32 %s3711_s25, 3  ;;  %p587_p4 = scmp.lt.s32.totalorder %s3129_s20, 1 }
  0x2e   : > { %s584_s27 = scalar_select %p583_p3, %s3133_s21, 1 }
  0x2f   : > { %s3306_s22 = scalar_select %p587_p4, %s3129_s20, 1 }
  0x30   : > { %s2536_s15 = sshll.u32 %s584_s27, 3  ;;  %s3741_s1 = sld [smem:[#allocation21_spill]] }
  0x31   : > { %s2537_s17 = sshll.u32 %s3306_s22, 1  ;;  %s3742_s2 = sld [smem:[#allocation22_spill]] }
  0x32   : > { %s3743_s3 = sld [smem:[#allocation23_spill]]  ;;  %s2900_s29 = smul.u32 192, %s3306_s22 }
  0x33   : > { %s2629_s19 = sshll.u32 %s3306_s22, 4  ;;  %s2901_s13 = smul.u32 12, %s3306_s22 }
  0x34   : > { %s3745_s6 = sld [smem:[#allocation25_spill]]  ;;  %s3347_s12 = scalar_lea.vmem %s3700_s8, %s2629_s19 }
  0x35   : > { %s3746_s4 = sld [smem:[#allocation24_spill]]  ;;  %s3363_s18 = scalar_lea.vmem [#allocation5], %s2535_s26 }
  0x36   : > { %s586_s23 = scalar_lea.vmem %s3741_s1, %s2536_s15  ;;  %s619_s15 = scalar_lea.vmem %s3701_s9, %s3306_s22 }
  0x37   : > { %s3315_s30 = scalar_lea.vmem %s3742_s2, %s2537_s17  ;;  %p2546_p5 = scmp.ne.s32.totalorder %s3129_s20, 0 }
  0x38   : > { %s3320_s14 = scalar_lea.vmem %s3743_s3, %s2537_s17  ;;  %s3342_s17 = scalar_lea.vmem %s3697_s5, %s2901_s13 }
  0x39   : > { %3744 = sst [smem:[#allocation20_spill]] %s3320_s14  ;;  %s627_s13 = scalar_lea.vmem %s3703_s11, %s3306_s22 }
  0x3a   : > { %s3328_s28 = scalar_lea.vmem %s3745_s6, %s2629_s19  ;;  %632 = sbr.rel (%p2546_p5) target bundleno = 71 (0x47), region = 76 }
  0x3b   : > { %s3333_s1 = scalar_lea.vmem %s3746_s4, %s2900_s29  ;;  %s2631_s29 = sshll.u32 %s3306_s22, 6 }
  0x3c   : > { %s3357_s0 = scalar_lea.vmem %s3702_s10, %s2631_s29  ;;  %s640_s3 = sld [smem:[#allocation4 + %s3133_s21]] (!%p2546_p5) }
  0x3f   : > { %v633_v0 = vld [vmem:[%s586_s23] sm:$0xff]  ;;  %vm634_vm0 = vcmask 261120   ;;  %v636_v1 = vlaneseq  ;;  %vm646_vm3 = vcmask 64512   ;;  %v3148_v5 = vmov -1e+09  }
  0x40   : > { %635 = vst.msk [vmem:[%s3363_s18] sm:$0xff] %vm634_vm0, %v633_v0 }
  0x41   : > { %v637_v2 = vshrl.u32 %v636_v1, 7  ;;  %v639_v3 = vand.u32 127, %v636_v1 }
  0x42   : > { %v641_v4 = vstv %s640_s3 }
  0x43   : > { %vm642_vm1 = vcmp.lt.s32.totalorder %v637_v2, %v641_v4  ;;  %vm643_vm2 = vcmp.lt.s32.totalorder %v639_v3, %v641_v4 }
  0x44   : > { %vm644_vm4 = vmand %vm642_vm1, %vm643_vm2 }
  0x45   : > { %v645_v6 = vsel %vm644_vm4, 0.0, %v3148_v5 }
  0x46   : > { %647 = vst.msk [vmem:[#allocation2] sm:$0xff] %vm646_vm3, %v645_v6 }
  0x47 PF: > { %v3369_v7 = vld [vmem:[%s3363_s18] sm:$0xff]  ;;  %vm739_vm5 = vcmask 261120   ;;  %v3149_v15 = vmov 0.0   ;;  %v2978_v16 = vld [vmem:[%s3333_s1] sm:$0xff]   ;;  %vm3150_vm6 = vmmov 0   ;;  %s3747_s2 = sld [smem:[#allocation20_spill]]  ;;  %v762_v25 = vlaneseq  ;;  %s3748_s6 = scalar_lea.vmem %s3699_s7, %s3306_s22 }
  0x48   : > { %v740_v8 = vsel %vm739_vm5, %v3369_v7, 0.0  ;;  %v2977_v14 = vld [vmem:[%s3333_s1 + $0x8] sm:$0xff]   ;;  %2704 = vmatprep.subr.bf16.mxu0 %v3149_v15  ;;  %2728 = vmatprep.subr.bf16.mxu1 %v3149_v15  ;;  %v3389_v28 = vld [vmem:[%s3315_s30] sm:$0x3]  ;;  %v2551_v45 = vld [vmem:[%s3342_s17 + $0x4] ss:$0 sm:$0xff] }
  0x49   : > { %741 = vadd.xlane.f32.xlu0 %v740_v8  ;;  %2705 = vmatpush3.bf16.msra.mxu0 %v2977_v14  ;;  %v3385_v26 = vshrl.u32 %v762_v25, 7  ;;  %v2979_v36 = vld [vmem:[%s3333_s1 + $0x48] sm:$0xff]   ;;  %v2980_v38 = vld [vmem:[%s3333_s1 + $0x40] sm:$0xff]   ;;  %vm953_vm9 = vcmask 64512   ;;  %vm1015_vm10 = vcmask 1043456   ;;  %v2983_v59 = vld [vmem:[%s3333_s1 + $0x18] sm:$0xff]  }
  0x4a   : > { %2706 = vmatprep.subr.bf16.mxu0 %v3149_v15  ;;  %2708 = vmatprep.mubr.msk.bf16.mxu0 %vm3150_vm6, %v3149_v15  ;;  %v2981_v39 = vld [vmem:[%s3333_s1 + $0x88] sm:$0xff]   ;;  %v2982_v40 = vld [vmem:[%s3333_s1 + $0x80] sm:$0xff]   ;;  %v2984_v1 = vld [vmem:[%s3333_s1 + $0x10] sm:$0xff]   ;;  %p2621_p6 = scmp.ge.s32.totalorder %s3129_s20, 1 }
  0x4b   : > { %2730 = vmatprep.mubr.msk.bf16.mxu1 %vm3150_vm6, %v3149_v15  ;;  %v764_v27 = vsub.s32 0, %v3385_v26  ;;  %v2547_v50 = vld [vmem:[%s3342_s17] ss:$0 sm:$0xff]  ;;  %v2555_v54 = vld [vmem:[%s3342_s17 + $0x8] ss:$0 sm:$0xff]  ;;  %v2985_v2 = vld [vmem:[%s3333_s1 + $0x98] sm:$0xff]  }
  0x4c   : > { %v2986_v3 = vld [vmem:[%s3333_s1 + $0x90] sm:$0xff]  }
  0x4d   : > { %2707 = vmatpush3.bf16.msra.mxu0 %v2978_v16  ;;  %v3392_v29 = vld [vmem:[%s3747_s2] sm:$0x3]  ;;  %v765_v30 = vrot.slane %v3389_v28, %v764_v27 }
  0x4e   : > { %2712 = vmatprep.subr.bf16.mxu0 %v3149_v15  ;;  %v770_v32 = vrot.slane %v3392_v29, %v764_v27  ;;  %v3444_v4 = vld [vmem:[#allocation2] sm:$0xff] }
  0xd2   : > { %v742_v9 = vpop.xlane.xlu0 %741 }
  0xd3   : > { %v744_v10 = vmul.f32 0.03125, %v742_v9 }
  0xd5   : > { %v745_v11 = vsub.f32 %v3369_v7, %v744_v10 }
  0xd7   : > { %v746_v12 = vmul.f32 %v745_v11, %v745_v11 }
  0xd9   : > { %v747_v13 = vsel %vm739_vm5, %v746_v12, 0.0 }
  0xda   : > { %748 = vadd.xlane.f32.xlu0 %v747_v13 }
 0x163   : > { %v749_v17 = vpop.xlane.xlu0 %748 }
 0x164   : > { %v751_v18 = vmul.f32 0.032258064, %v749_v17  ;;  %v2569_v17 = vld [vmem:[%s3342_s17 + $0x9] ss:$0 sm:$0xff] }
 0x166   : > { %3011 = vrsqrt.f32 %v751_v18  ;;  %vm754_vm7 = vcmp.eq.f32.partialorder %v751_v18, inf  ;;  %v757_v21 = vand.u32 2147483648, %v751_v18  ;;  %vm756_vm8 = vcmp.eq.f32.partialorder %v751_v18, 0.0 }
 0x173   : > { %v3012_v19 = vpop.eup %3011 }
 0x174   : > { %v753_v20 = vmul.f32 %v3012_v19, %v751_v18 }
 0x176   : > { %v755_v22 = vsel %vm754_vm7, %v751_v18, %v753_v20 }
 0x177   : > { %v758_v23 = vsel %vm756_vm8, %v757_v21, %v755_v22 }
 0x178   : > { %v759_v24 = vadd.f32 1e-06, %v758_v23 }
 0x17a   : > { %3013 = vrcp.f32 %v759_v24 }
 0x187   : > { %v3014_v31 = vpop.eup %3013 }
 0x188   : > { %v761_v33 = vmul.f32 %v3014_v31, %v745_v11 }
 0x18a   : > { %v766_v34 = vmul.f32 %v765_v30, %v761_v33 }
 0x18c   : > { %v771_v35 = vadd.f32 %v770_v32, %v766_v34 }
 0x18e   : > { %v3397_v37 = vpack.c.bf16 %v771_v35, %v771_v35 }
 0x190   : > { %2709 = vmatmul.mubr.msk.bf16.vlgmr.msra.gmra.mxu0 %vm739_vm5, %v3397_v37 }
 0x191   : > { %2713 = vmatpush3.bf16.msra.mxu0 %v2979_v36  ;;  %2716 = vmatprep.mubr.msk.bf16.mxu0 %vm3150_vm6, %v3149_v15  ;;  %v2987_v36 = vld [vmem:[%s3333_s1 + $0x58] sm:$0xff]  }
 0x192   : > { %2714 = vmatprep.subr.bf16.mxu0 %v3149_v15 }
 0x195   : > { %2715 = vmatpush3.bf16.msra.mxu0 %v2980_v38 }
 0x196   : > { %2720 = vmatprep.subr.bf16.mxu0 %v3149_v15 }
 0x198   : > { %2717 = vmatmul.mubr.msk.bf16.vlgmr.msra.gmra.mxu0 %vm739_vm5, %v3397_v37 }
 0x199   : > { %2721 = vmatpush3.bf16.msra.mxu0 %v2981_v39  ;;  %2724 = vmatprep.mubr.msk.bf16.mxu0 %vm3150_vm6, %v3149_v15  ;;  %v2988_v39 = vld [vmem:[%s3333_s1 + $0x50] sm:$0xff]  }
 0x19a   : > { %2722 = vmatprep.subr.bf16.mxu0 %v3149_v15 }
 0x19d   : > { %2723 = vmatpush3.bf16.msra.mxu0 %v2982_v40 }
 0x19e   : > { %2734 = vmatprep.subr.bf16.mxu0 %v3149_v15 }
 0x1a0   : > { %2725 = vmatmul.mubr.msk.bf16.vlgmr.msra.gmra.mxu0 %vm739_vm5, %v3397_v37 }
 0x1a1   : > { %2736 = vmatprep.mubr.msk.bf16.mxu0 %vm3150_vm6, %v3149_v15 }
 0x250   : > { %v828_v41 = vpop.f32.mrf.mxu0 }
 0x251   : > { %v829_v55 = vadd.f32 %v2547_v50, %v828_v41 }
 0x252   : > { %v2710_v42 = vpop.f32.mrf.mxu0 }
 0x253   : > { %v950_v60 = vpack.c.bf16 %v829_v55, %v829_v55 }
 0x254   : > { %v831_v43 = vpop.f32.mrf.mxu0 }
 0x256   : > { %v2711_v44 = vpop.f32.mrf.mxu0 }
 0x257   : > { %v2565_v44 = vld [vmem:[%s3342_s17 + $0x5] ss:$0 sm:$0xff] }
 0x258   : > { %v886_v46 = vpop.f32.mrf.mxu0 }
 0x259   : > { %v887_v47 = vadd.f32 %v2551_v45, %v886_v46 }
 0x25a   : > { %v2718_v48 = vpop.f32.mrf.mxu0 }
 0x25b   : > { %v951_v49 = vpack.c.bf16 %v887_v47, %v887_v47 }
 0x25c   : > { %v889_v51 = vpop.f32.mrf.mxu0 }
 0x25d   : > { %v958_v52 = vsel %vm953_vm9, %v951_v49, 0  ;;  %v2561_v49 = vld [vmem:[%s3342_s17 + $0x1] ss:$0 sm:$0xff] }
 0x25e   : > { %v2719_v53 = vpop.f32.mrf.mxu0  ;;  %2729 = vmatpush3.bf16.xpose.msra.mxu1 %v958_v52 }
 0x25f   : > { %2740 = vmatprep.subr.bf16.mxu1 %v3149_v15 }
 0x260   : > { %v944_v56 = vpop.f32.mrf.mxu0 }
 0x261   : > { %v945_v57 = vadd.f32 %v2555_v54, %v944_v56 }
 0x262   : > { %v2726_v58 = vpop.f32.mrf.mxu0 }
 0x263   : > { %v952_v61 = vpack.c.bf16 %v945_v57, %v945_v57 }
 0x264   : > { %v947_v62 = vpop.f32.mrf.mxu0 }
 0x265   : > { %v1017_v63 = vsel %vm1015_vm10, %v952_v61, 0  ;;  %2731 = vmatmul.mubr.msk.bf16.vlgmr.msra.gmra.mxu1 %vm953_vm9, %v950_v60 }
 0x266   : > { %v2727_v0 = vpop.f32.mrf.mxu0  ;;  %2735 = vmatpush3.bf16.msra.mxu0 %v1017_v63  ;;  %2741 = vmatpush3.bf16.msra.mxu1 %v2983_v59 }
 0x267   : > { %2742 = vmatprep.subr.bf16.mxu1 %v3149_v15  ;;  %2744 = vmatprep.mubr.msk.bf16.mxu1 %vm3150_vm6, %v3149_v15 }
 0x268   : > { %2748 = vmatprep.subr.bf16.mxu0 %v3149_v15 }
 0x26a   : > { %2743 = vmatpush3.bf16.msra.mxu1 %v2984_v1 }
 0x26b   : > { %2756 = vmatprep.subr.bf16.mxu1 %v3149_v15 }
 0x26d   : > { %2745 = vmatmul.mubr.msk.bf16.vlgmr.msra.gmra.mxu1 %vm739_vm5, %v3397_v37 }
 0x26e   : > { %2757 = vmatpush3.bf16.msra.mxu1 %v2985_v2  ;;  %2760 = vmatprep.mubr.msk.bf16.mxu1 %vm3150_vm6, %v3149_v15  ;;  %v713_v2 = vld [vmem:[%s3328_s28 + $0x4] sm:$0xf] }
 0x26f   : > { %2758 = vmatprep.subr.bf16.mxu1 %v3149_v15 }
 0x272   : > { %2759 = vmatpush3.bf16.msra.mxu1 %v2986_v3  ;;  %v1346_v3 = vsel %vm1015_vm10, %v713_v2, 0 }
 0x273   : > { %2770 = vmatprep.subr.bf16.mxu1 %v3149_v15 }
 0x275   : > { %2761 = vmatmul.mubr.msk.bf16.vlgmr.msra.gmra.mxu1 %vm739_vm5, %v3397_v37 }
 0x276   : > { %2772 = vmatprep.mubr.msk.bf16.mxu1 %vm3150_vm6, %v3149_v15 }
 0x325   : > { %v994_v5 = vpop.f32.mrf.mxu1 }
 0x326   : > { %v995_v6 = vadd.f32 %v994_v5, %v3444_v4 }
 0x327   : > { %v2732_v8 = vpop.f32.mrf.mxu1 }
 0x328   : > { %v1000_v9 = vsel %vm953_vm9, %v995_v6, -inf  ;;  %v712_v8 = vld [vmem:[%s3328_s28] sm:$0xf] }
 0x329   : > { %1001 = vmax.xlane.f32.xlu1 %v1000_v9  ;;  %v997_v10 = vpop.f32.mrf.mxu1 }
 0x32b   : > { %v2733_v11 = vpop.f32.mrf.mxu1 }
 0x32c   : > { %v1392_v11 = vsel %vm1015_vm10, %v712_v8, 0 }
 0x32d   : > { %v1112_v12 = vpop.f32.mrf.mxu1 }
 0x32e   : > { %v1113_v53 = vadd.f32 %v2561_v49, %v1112_v12  ;;  %v2989_v12 = vld [vmem:[%s3333_s1 + $0x68] sm:$0xff]  }
 0x32f   : > { %v2746_v13 = vpop.f32.mrf.mxu1 }
 0x330   : > { %v1234_v54 = vpack.c.bf16 %v1113_v53, %v1113_v53 }
 0x331   : > { %v1115_v14 = vpop.f32.mrf.mxu1 }
 0x332   : > { %v2990_v14 = vld [vmem:[%s3333_s1 + $0x60] sm:$0xff]  }
 0x333   : > { %v2747_v16 = vpop.f32.mrf.mxu1 }
 0x335   : > { %v1228_v18 = vpop.f32.mrf.mxu1 }
 0x336   : > { %v1229_v19 = vadd.f32 %v2569_v17, %v1228_v18  ;;  %v2991_v17 = vld [vmem:[%s3333_s1 + $0x28] sm:$0xff]  }
 0x337   : > { %v2762_v20 = vpop.f32.mrf.mxu1 }
 0x338   : > { %v1236_v21 = vpack.c.bf16 %v1229_v19, %v1229_v19 }
 0x339   : > { %v1231_v22 = vpop.f32.mrf.mxu1 }
 0x33a   : > { %v1299_v23 = vsel %vm1015_vm10, %v1236_v21, 0  ;;  %v2992_v21 = vld [vmem:[%s3333_s1 + $0x20] sm:$0xff]  }
 0x33b   : > { %v2763_v24 = vpop.f32.mrf.mxu1  ;;  %2771 = vmatpush3.bf16.msra.mxu1 %v1299_v23 }
 0x33c   : > { %2782 = vmatprep.subr.bf16.mxu1 %v3149_v15  ;;  %v2993_v24 = vld [vmem:[%s3333_s1 + $0xa8] sm:$0xff]  }
 0x3b2   : > { %v1002_v25 = vpop.xlane.xlu1 %1001 }
 0x3b3   : > { %v1003_v27 = vsub.f32 %v995_v6, %v1002_v25 }
 0x3b5   : > { %v1004_v30 = vmul.f32 1.442695, %v1003_v27 }
 0x3b7   : > { %3015 = vpow2.f32 %v1004_v30  ;;  %v2994_v30 = vld [vmem:[%s3333_s1 + $0xa0] sm:$0xff]  }
 0x3c4   : > { %v3016_v31 = vpop.eup %3015 }
 0x3c5   : > { %v1006_v32 = vsel %vm953_vm9, %v3016_v31, 0.0 }
 0x3c6   : > { %1007 = vadd.xlane.f32.xlu1 %v1006_v32  ;;  %v2581_v32 = vld [vmem:[%s3342_s17 + $0x6] ss:$0 sm:$0xff] }
 0x44f   : > { %v1008_v33 = vpop.xlane.xlu1 %1007 }
 0x450   : > { %3017 = vrcp.f32 %v1008_v33 }
 0x45d   : > { %v3018_v34 = vpop.eup %3017 }
 0x45e   : > { %v1010_v35 = vmul.f32 %v3018_v34, %v3016_v31 }
 0x460   : > { %v1011_v38 = vpack.c.bf16 %v1010_v35, %v1010_v35 }
 0x462   : > { %2737 = vmatmul.mubr.msk.bf16.vlgmr.msra.gmra.mxu0 %vm953_vm9, %v1011_v38 }
 0x463   : > { %2749 = vmatpush3.bf16.msra.mxu0 %v2987_v36  ;;  %2752 = vmatprep.mubr.msk.bf16.mxu0 %vm3150_vm6, %v3149_v15 }
 0x464   : > { %2750 = vmatprep.subr.bf16.mxu0 %v3149_v15 }
 0x467   : > { %2751 = vmatpush3.bf16.msra.mxu0 %v2988_v39 }
 0x468   : > { %2764 = vmatprep.subr.bf16.mxu0 %v3149_v15 }
 0x46a   : > { %2753 = vmatmul.mubr.msk.bf16.vlgmr.msra.gmra.mxu0 %vm739_vm5, %v3397_v37 }
 0x46b   : > { %2766 = vmatprep.mubr.msk.bf16.mxu0 %vm3150_vm6, %v3149_v15 }
 0x522   : > { %v1053_v40 = vpop.f32.mrf.mxu0 }
 0x523   : > { %v1059_v13 = vpack.c.bf16 %v1053_v40, %v1053_v40 }
 0x524   : > { %v2738_v41 = vpop.f32.mrf.mxu0 }
 0x526   : > { %v1056_v42 = vpop.f32.mrf.mxu0 }
 0x528   : > { %v2739_v43 = vpop.f32.mrf.mxu0 }
 0x52a   : > { %v1170_v45 = vpop.f32.mrf.mxu0 }
 0x52b   : > { %v1171_v46 = vadd.f32 %v2565_v44, %v1170_v45  ;;  %v2577_v45 = vld [vmem:[%s3342_s17 + $0x2] ss:$0 sm:$0xff] }
 0x52c   : > { %v2754_v47 = vpop.f32.mrf.mxu0 }
 0x52d   : > { %v1235_v48 = vpack.c.bf16 %v1171_v46, %v1171_v46 }
 0x52e   : > { %v1173_v50 = vpop.f32.mrf.mxu0 }
 0x52f   : > { %v1241_v51 = vsel %vm953_vm9, %v1235_v48, 0 }
 0x530   : > { %v2755_v52 = vpop.f32.mrf.mxu0  ;;  %2765 = vmatpush3.bf16.xpose.msra.mxu0 %v1241_v51 }
 0x531   : > { %2776 = vmatprep.subr.bf16.mxu0 %v3149_v15  ;;  %v2585_v52 = vld [vmem:[%s3342_s17 + $0xa] ss:$0 sm:$0xff] }
 0x537   : > { %2767 = vmatmul.mubr.msk.bf16.vlgmr.msra.gmra.mxu0 %vm953_vm9, %v1234_v54 }
 0x538   : > { %2778 = vmatprep.mubr.msk.bf16.mxu0 %vm3150_vm6, %v3149_v15  ;;  %2777 = vmatpush3.bf16.msra.mxu0 %v1346_v3 }
 0x539   : > { %2788 = vmatprep.subr.bf16.mxu0 %v3149_v15 }
 0x5f7   : > { %v1277_v55 = vpop.f32.mrf.mxu0 }
 0x5f8   : > { %v1278_v56 = vadd.f32 %v1277_v55, %v3444_v4 }
 0x5f9   : > { %v2768_v57 = vpop.f32.mrf.mxu0 }
 0x5fa   : > { %v1283_v58 = vsel %vm953_vm9, %v1278_v56, -inf }
 0x5fb   : > { %1284 = vmax.xlane.f32.xlu0 %v1283_v58  ;;  %v1280_v59 = vpop.f32.mrf.mxu0 }
 0x5fd   : > { %v2769_v60 = vpop.f32.mrf.mxu0 }
 0x684   : > { %v1285_v61 = vpop.xlane.xlu0 %1284 }
 0x685   : > { %v1286_v62 = vsub.f32 %v1278_v56, %v1285_v61 }
 0x687   : > { %v1287_v63 = vmul.f32 1.442695, %v1286_v62 }
 0x689   : > { %3019 = vpow2.f32 %v1287_v63 }
 0x696   : > { %v3020_v0 = vpop.eup %3019 }
 0x697   : > { %v1289_v1 = vsel %vm953_vm9, %v3020_v0, 0.0 }
 0x698   : > { %1290 = vadd.xlane.f32.xlu1 %v1289_v1 }
 0x721   : > { %v1291_v5 = vpop.xlane.xlu1 %1290 }
 0x722   : > { %3021 = vrcp.f32 %v1291_v5 }
 0x72f   : > { %v3022_v6 = vpop.eup %3021 }
 0x730   : > { %v1293_v9 = vmul.f32 %v3022_v6, %v3020_v0 }
 0x732   : > { %v1294_v10 = vpack.c.bf16 %v1293_v9, %v1293_v9  ;;  %v714_v9 = vld [vmem:[%s3328_s28 + $0x8] sm:$0xf] }
 0x734   : > { %2773 = vmatmul.mubr.msk.bf16.vlgmr.msra.gmra.mxu1 %vm953_vm9, %v1294_v10  ;;  %v1720_v10 = vsel %vm1015_vm10, %v714_v9, 0 }
 0x735   : > { %2783 = vmatpush3.bf16.msra.mxu1 %v1392_v11  ;;  %2784 = vmatprep.mubr.msk.bf16.mxu1 %vm3150_vm6, %v3149_v15 }
 0x736   : > { %2796 = vmatprep.subr.bf16.mxu1 %v3149_v15 }
 0x73c   : > { %2785 = vmatmul.mubr.msk.bf16.vlgmr.msra.gmra.mxu1 %vm953_vm9, %v1059_v13 }
 0x73d   : > { %2797 = vmatpush3.bf16.msra.mxu1 %v2989_v12  ;;  %2800 = vmatprep.mubr.msk.bf16.mxu1 %vm3150_vm6, %v3149_v15 }
 0x73e   : > { %2798 = vmatprep.subr.bf16.mxu1 %v3149_v15 }
 0x741   : > { %2799 = vmatpush3.bf16.msra.mxu1 %v2990_v14  ;;  %v2995_v14 = vld [vmem:[%s3333_s1 + $0x38] sm:$0xff]  }
 0x742   : > { %2812 = vmatprep.subr.bf16.mxu1 %v3149_v15 }
 0x744   : > { %2801 = vmatmul.mubr.msk.bf16.vlgmr.msra.gmra.mxu1 %vm739_vm5, %v3397_v37 }
 0x745   : > { %2814 = vmatprep.mubr.msk.bf16.mxu1 %vm3150_vm6, %v3149_v15 }
 0x7f4   : > { %v1335_v16 = vpop.f32.mrf.mxu1 }
 0x7f5   : > { %v1341_v18 = vpack.c.bf16 %v1335_v16, %v1335_v16 }
 0x7f6   : > { %v2774_v19 = vpop.f32.mrf.mxu1 }
 0x7f7   : > { %2779 = vmatmul.mubr.msk.bf16.vlgmr.msra.gmra.mxu0 %vm953_vm9, %v1341_v18  ;;  %v2997_v18 = vld [vmem:[%s3333_s1 + $0xb8] sm:$0xff]   ;;  %v2998_v19 = vld [vmem:[%s3333_s1 + $0xb0] sm:$0xff]  }
 0x7f8   : > { %v1338_v20 = vpop.f32.mrf.mxu1  ;;  %2789 = vmatpush3.bf16.msra.mxu0 %v2991_v17  ;;  %2792 = vmatprep.mubr.msk.bf16.mxu0 %vm3150_vm6, %v3149_v15  ;;  %v2996_v17 = vld [vmem:[%s3333_s1 + $0x30] sm:$0xff]  }
 0x7f9   : > { %2790 = vmatprep.subr.bf16.mxu0 %v3149_v15 }
 0x7fa   : > { %v2775_v22 = vpop.f32.mrf.mxu1 }
 0x7fc   : > { %v3499_v23 = vpop.f32.mrf.mxu1  ;;  %2791 = vmatpush3.bf16.msra.mxu0 %v2992_v21  ;;  %v2999_v21 = vld [vmem:[%s3333_s1 + $0x78] sm:$0xff]  }
 0x7fd   : > { %2804 = vmatprep.subr.bf16.mxu0 %v3149_v15 }
 0x7fe   : > { %v2786_v25 = vpop.f32.mrf.mxu1 }
 0x7ff   : > { %2793 = vmatmul.mubr.msk.bf16.vlgmr.msra.gmra.mxu0 %vm739_vm5, %v3397_v37 }
 0x800   : > { %v1431_v27 = vpop.f32.mrf.mxu1  ;;  %2805 = vmatpush3.bf16.msra.mxu0 %v2993_v24  ;;  %2808 = vmatprep.mubr.msk.bf16.mxu0 %vm3150_vm6, %v3149_v15 }
 0x801   : > { %2806 = vmatprep.subr.bf16.mxu0 %v3149_v15  ;;  %v3000_v27 = vld [vmem:[%s3333_s1 + $0x70] sm:$0xff]  }
 0x802   : > { %v2787_v31 = vpop.f32.mrf.mxu1 }
 0x804   : > { %v1544_v33 = vpop.f32.mrf.mxu1  ;;  %2807 = vmatpush3.bf16.msra.mxu0 %v2994_v30 }
 0x805   : > { %v1545_v34 = vadd.f32 %v2581_v32, %v1544_v33  ;;  %2818 = vmatprep.subr.bf16.mxu0 %v3149_v15 }
 0x806   : > { %v2802_v35 = vpop.f32.mrf.mxu1 }
 0x807   : > { %v1609_v36 = vpack.c.bf16 %v1545_v34, %v1545_v34  ;;  %2809 = vmatmul.mubr.msk.bf16.vlgmr.msra.gmra.mxu0 %vm739_vm5, %v3397_v37  ;;  %v2600_v35 = vld [vmem:[%s3342_s17 + $0xb] ss:$0 sm:$0xff] }
 0x808   : > { %v1547_v38 = vpop.f32.mrf.mxu1  ;;  %2820 = vmatprep.mubr.msk.bf16.mxu0 %vm3150_vm6, %v3149_v15 }
 0x809   : > { %v1615_v39 = vsel %vm953_vm9, %v1609_v36, 0 }
 0x80a   : > { %v2803_v40 = vpop.f32.mrf.mxu1  ;;  %2813 = vmatpush3.bf16.xpose.msra.mxu1 %v1615_v39 }
 0x80b   : > { %2824 = vmatprep.subr.bf16.mxu1 %v3149_v15 }
 0x8b7   : > { %v3517_v41 = vpop.f32.mrf.mxu0 }
 0x8b9   : > { %v2780_v42 = vpop.f32.mrf.mxu0 }
 0x8bb   : > { %v1385_v43 = vpop.f32.mrf.mxu0 }
 0x8bd   : > { %v2781_v44 = vpop.f32.mrf.mxu0 }
 0x8bf   : > { %v1486_v46 = vpop.f32.mrf.mxu0 }
 0x8c0   : > { %v1487_v47 = vadd.f32 %v2577_v45, %v1486_v46 }
 0x8c1   : > { %v2794_v48 = vpop.f32.mrf.mxu0 }
 0x8c2   : > { %v1608_v49 = vpack.c.bf16 %v1487_v47, %v1487_v47 }
 0x8c3   : > { %v1489_v50 = vpop.f32.mrf.mxu0 }
 0x8c4   : > { %2815 = vmatmul.mubr.msk.bf16.vlgmr.msra.gmra.mxu1 %vm953_vm9, %v1608_v49  ;;  %v2596_v50 = vld [vmem:[%s3342_s17 + $0x7] ss:$0 sm:$0xff] }
 0x8c5   : > { %v2795_v51 = vpop.f32.mrf.mxu0  ;;  %2826 = vmatprep.mubr.msk.bf16.mxu1 %vm3150_vm6, %v3149_v15  ;;  %2825 = vmatpush3.bf16.msra.mxu1 %v1720_v10 }
 0x8c6   : > { %2838 = vmatprep.subr.bf16.mxu1 %v3149_v15 }
 0x8c7   : > { %v1602_v53 = vpop.f32.mrf.mxu0 }
 0x8c8   : > { %v1603_v54 = vadd.f32 %v2585_v52, %v1602_v53 }
 0x8c9   : > { %v2810_v55 = vpop.f32.mrf.mxu0 }
 0x8ca   : > { %v1610_v56 = vpack.c.bf16 %v1603_v54, %v1603_v54  ;;  %v2592_v55 = vld [vmem:[%s3342_s17 + $0x3] ss:$0 sm:$0xff] }
 0x8cb   : > { %v1605_v57 = vpop.f32.mrf.mxu0 }
 0x8cc   : > { %v1673_v58 = vsel %vm1015_vm10, %v1610_v56, 0 }
 0x8cd   : > { %v2811_v59 = vpop.f32.mrf.mxu0  ;;  %2819 = vmatpush3.bf16.msra.mxu0 %v1673_v58 }
 0x8ce   : > { %2830 = vmatprep.subr.bf16.mxu0 %v3149_v15 }
 0x984   : > { %v1651_v60 = vpop.f32.mrf.mxu1 }
 0x985   : > { %v1652_v61 = vadd.f32 %v1651_v60, %v3444_v4 }
 0x986   : > { %v2816_v62 = vpop.f32.mrf.mxu1 }
 0x987   : > { %v1657_v63 = vsel %vm953_vm9, %v1652_v61, -inf }
 0x988   : > { %1658 = vmax.xlane.f32.xlu0 %v1657_v63  ;;  %v1654_v0 = vpop.f32.mrf.mxu1 }
 0x98a   : > { %v2817_v1 = vpop.f32.mrf.mxu1 }
 0xa11   : > { %v1659_v2 = vpop.xlane.xlu0 %1658 }
 0xa12   : > { %v1660_v3 = vsub.f32 %v1652_v61, %v1659_v2 }
 0xa14   : > { %v1661_v5 = vmul.f32 1.442695, %v1660_v3 }
 0xa16   : > { %3023 = vpow2.f32 %v1661_v5 }
 0xa23   : > { %v3024_v6 = vpop.eup %3023 }
 0xa24   : > { %v1663_v8 = vsel %vm953_vm9, %v3024_v6, 0.0 }
 0xa25   : > { %1664 = vadd.xlane.f32.xlu1 %v1663_v8  ;;  %v715_v8 = vld [vmem:[%s3328_s28 + $0xc] sm:$0xf] }
 0xa26   : > { %v2049_v9 = vsel %vm1015_vm10, %v715_v8, 0 }
 0xaae   : > { %v1665_v11 = vpop.xlane.xlu1 %1664 }
 0xaaf   : > { %3025 = vrcp.f32 %v1665_v11 }
 0xabc   : > { %v3026_v12 = vpop.eup %3025 }
 0xabd   : > { %v1667_v13 = vmul.f32 %v3026_v12, %v3024_v6 }
 0xabf   : > { %v1668_v16 = vpack.c.bf16 %v1667_v13, %v1667_v13 }
 0xac1   : > { %2821 = vmatmul.mubr.msk.bf16.vlgmr.msra.gmra.mxu0 %vm953_vm9, %v1668_v16 }
 0xac2   : > { %2831 = vmatpush3.bf16.msra.mxu0 %v2995_v14  ;;  %2834 = vmatprep.mubr.msk.bf16.mxu0 %vm3150_vm6, %v3149_v15 }
 0xac3   : > { %2832 = vmatprep.subr.bf16.mxu0 %v3149_v15 }
 0xac6   : > { %2833 = vmatpush3.bf16.msra.mxu0 %v2996_v17 }
 0xac7   : > { %2846 = vmatprep.subr.bf16.mxu0 %v3149_v15 }
 0xac9   : > { %2835 = vmatmul.mubr.msk.bf16.vlgmr.msra.gmra.mxu0 %vm739_vm5, %v3397_v37 }
 0xaca   : > { %2847 = vmatpush3.bf16.msra.mxu0 %v2997_v18  ;;  %2850 = vmatprep.mubr.msk.bf16.mxu0 %vm3150_vm6, %v3149_v15 }
 0xacb   : > { %2848 = vmatprep.subr.bf16.mxu0 %v3149_v15 }
 0xace   : > { %2849 = vmatpush3.bf16.msra.mxu0 %v2998_v19  ;;  %v2607_v19 = vld [vmem:[%s3748_s6] ss:$0 sm:$0xff] }
 0xacf   : > { %2860 = vmatprep.subr.bf16.mxu0 %v3149_v15 }
 0xad1   : > { %2851 = vmatmul.mubr.msk.bf16.vlgmr.msra.gmra.mxu0 %vm739_vm5, %v3397_v37 }
 0xad2   : > { %2862 = vmatprep.mubr.msk.bf16.mxu0 %vm3150_vm6, %v3149_v15 }
 0xb81   : > { %v1709_v20 = vpop.f32.mrf.mxu0 }
 0xb82   : > { %v1715_v22 = vpack.c.bf16 %v1709_v20, %v1709_v20 }
 0xb83   : > { %v2822_v24 = vpop.f32.mrf.mxu0 }
 0xb84   : > { %2827 = vmatmul.mubr.msk.bf16.vlgmr.msra.gmra.mxu1 %vm953_vm9, %v1715_v22 }
 0xb85   : > { %v1712_v25 = vpop.f32.mrf.mxu0  ;;  %2839 = vmatpush3.bf16.msra.mxu1 %v2999_v21  ;;  %2842 = vmatprep.mubr.msk.bf16.mxu1 %vm3150_vm6, %v3149_v15 }
 0xb86   : > { %2840 = vmatprep.subr.bf16.mxu1 %v3149_v15 }
 0xb87   : > { %v2823_v30 = vpop.f32.mrf.mxu0 }
 0xb89   : > { %v1815_v31 = vpop.f32.mrf.mxu0  ;;  %2841 = vmatpush3.bf16.msra.mxu1 %v3000_v27 }
 0xb8a   : > { %2854 = vmatprep.subr.bf16.mxu1 %v3149_v15  ;;  %v1816_v59 = vadd.f32 %v2592_v55, %v1815_v31 }
 0xb8b   : > { %v2836_v32 = vpop.f32.mrf.mxu0 }
 0xb8c   : > { %2843 = vmatmul.mubr.msk.bf16.vlgmr.msra.gmra.mxu1 %vm739_vm5, %v3397_v37  ;;  %v1429_v37 = vadd.f32 %v3499_v23, %v3517_v41  ;;  %v1937_v23 = vpack.c.bf16 %v1816_v59, %v1816_v59 }
 0xb8d   : > { %v1818_v33 = vpop.f32.mrf.mxu0  ;;  %2856 = vmatprep.mubr.msk.bf16.mxu1 %vm3150_vm6, %v3149_v15 }
 0xb8f   : > { %v2837_v34 = vpop.f32.mrf.mxu0 }
 0xb91   : > { %v1931_v36 = vpop.f32.mrf.mxu0 }
 0xb92   : > { %v1932_v38 = vadd.f32 %v2600_v35, %v1931_v36 }
 0xb93   : > { %v2852_v39 = vpop.f32.mrf.mxu0 }
 0xb94   : > { %v1939_v40 = vpack.c.bf16 %v1932_v38, %v1932_v38  ;;  %v3001_v38 = vld [vmem:[%s3347_s12 + $0x8] sm:$0xff]   ;;  %v3003_v39 = vld [vmem:[%s3357_s0 + $0x38] sm:$0xff]  }
 0xb95   : > { %v1934_v42 = vpop.f32.mrf.mxu0 }
 0xb96   : > { %v2002_v43 = vsel %vm1015_vm10, %v1939_v40, 0  ;;  %v3004_v40 = vld [vmem:[%s3357_s0 + $0x30] sm:$0xff]   ;;  %v3005_v42 = vld [vmem:[%s3357_s0 + $0x28] sm:$0xff]  }
 0xb97   : > { %v2853_v44 = vpop.f32.mrf.mxu0  ;;  %2861 = vmatpush3.bf16.msra.mxu0 %v2002_v43  ;;  %v3006_v43 = vld [vmem:[%s3357_s0 + $0x20] sm:$0xff]  }
 0xb98   : > { %2872 = vmatprep.subr.bf16.mxu0 %v3149_v15  ;;  %v3007_v44 = vld [vmem:[%s3357_s0 + $0x18] sm:$0xff]  }
 0xc44   : > { %v1756_v45 = vpop.f32.mrf.mxu1 }
 0xc45   : > { %v1762_v46 = vadd.f32 %v1756_v45, %v1429_v37  ;;  %v3008_v37 = vld [vmem:[%s3357_s0 + $0x10] sm:$0xff]  }
 0xc46   : > { %v2828_v47 = vpop.f32.mrf.mxu1 }
 0xc48   : > { %v1759_v48 = vpop.f32.mrf.mxu1 }
 0xc4a   : > { %v2829_v49 = vpop.f32.mrf.mxu1 }
 0xc4c   : > { %v1873_v51 = vpop.f32.mrf.mxu1 }
 0xc4d   : > { %v1874_v52 = vadd.f32 %v2596_v50, %v1873_v51 }
 0xc4e   : > { %v2844_v53 = vpop.f32.mrf.mxu1 }
 0xc4f   : > { %v1938_v54 = vpack.c.bf16 %v1874_v52, %v1874_v52  ;;  %v2122_v53 = vsub.s32 1, %v3385_v26  ;;  %v2608_v26 = vld [vmem:[%s619_s15] ss:$0 sm:$0xff] }
 0xc50   : > { %v1876_v56 = vpop.f32.mrf.mxu1 }
 0xc51   : > { %v1944_v57 = vsel %vm953_vm9, %v1938_v54, 0  ;;  %v2123_v54 = vrot.slane %v3389_v28, %v2122_v53 }
 0xc52   : > { %v2845_v58 = vpop.f32.mrf.mxu1  ;;  %2855 = vmatpush3.bf16.xpose.msra.mxu1 %v1944_v57  ;;  %v2128_v57 = vrot.slane %v3392_v29, %v2122_v53 }
 0xc53   : > { %2866 = vmatprep.subr.bf16.mxu1 %v3149_v15 }
 0xc59   : > { %2857 = vmatmul.mubr.msk.bf16.vlgmr.msra.gmra.mxu1 %vm953_vm9, %v1937_v23 }
 0xc5a   : > { %2868 = vmatprep.mubr.msk.bf16.mxu1 %vm3150_vm6, %v3149_v15  ;;  %2867 = vmatpush3.bf16.msra.mxu1 %v2049_v9 }
 0xc5b   : > { %2880 = vmatprep.subr.bf16.mxu1 %v3149_v15 }
 0xd19   : > { %v1980_v41 = vpop.f32.mrf.mxu1 }
 0xd1a   : > { %v1981_v60 = vadd.f32 %v1980_v41, %v3444_v4  ;;  %v3009_v41 = vld [vmem:[%s3357_s0 + $0x8] sm:$0xff]  }
 0xd1b   : > { %v2858_v61 = vpop.f32.mrf.mxu1 }
 0xd1c   : > { %v1986_v62 = vsel %vm953_vm9, %v1981_v60, -inf }
 0xd1d   : > { %1987 = vmax.xlane.f32.xlu0 %v1986_v62  ;;  %v1983_v63 = vpop.f32.mrf.mxu1 }
 0xd1f   : > { %v2859_v0 = vpop.f32.mrf.mxu1 }
 0xda6   : > { %v1988_v1 = vpop.xlane.xlu0 %1987 }
 0xda7   : > { %v1989_v2 = vsub.f32 %v1981_v60, %v1988_v1  ;;  %v3010_v60 = vld [vmem:[%s3357_s0] sm:$0xff]  }
 0xda9   : > { %v1990_v3 = vmul.f32 1.442695, %v1989_v2 }
 0xdab   : > { %3027 = vpow2.f32 %v1990_v3 }
 0xdb8   : > { %v3028_v5 = vpop.eup %3027 }
 0xdb9   : > { %v1992_v6 = vsel %vm953_vm9, %v3028_v5, 0.0 }
 0xdba   : > { %1993 = vadd.xlane.f32.xlu1 %v1992_v6 }
 0xe43   : > { %v1994_v4 = vpop.xlane.xlu1 %1993 }
 0xe44   : > { %3029 = vrcp.f32 %v1994_v4 }
 0xe51   : > { %v3030_v10 = vpop.eup %3029 }
 0xe52   : > { %v1996_v11 = vmul.f32 %v3030_v10, %v3028_v5 }
 0xe54   : > { %v1997_v12 = vpack.c.bf16 %v1996_v11, %v1996_v11 }
 0xe56   : > { %2863 = vmatmul.mubr.msk.bf16.vlgmr.msra.gmra.mxu0 %vm953_vm9, %v1997_v12 }
 0xe57   : > { %2876 = vmatprep.mubr.msk.bf16.mxu0 %vm3150_vm6, %v3149_v15  ;;  %2873 = vmatpush3.bf16.msra.mxu0 %v3001_v38 }
 0xe58   : > { %2874 = vmatprep.subr.bf16.mxu0 %v3149_v15 }
 0xf16   : > { %v2038_v13 = vpop.f32.mrf.mxu0 }
 0xf17   : > { %v2044_v14 = vpack.c.bf16 %v2038_v13, %v2038_v13 }
 0xf18   : > { %v2864_v16 = vpop.f32.mrf.mxu0 }
 0xf19   : > { %2869 = vmatmul.mubr.msk.bf16.vlgmr.msra.gmra.mxu1 %vm953_vm9, %v2044_v14 }
 0xf1a   : > { %v2041_v17 = vpop.f32.mrf.mxu0  ;;  %2896 = vmatprep.mubr.msk.bf16.mxu1 %vm3150_vm6, %v3149_v15  ;;  %2881 = vmatpush3.bf16.msra.mxu1 %v3003_v39 }
 0xf1b   : > { %2882 = vmatprep.subr.bf16.mxu1 %v3149_v15 }
 0xf1c   : > { %v2865_v18 = vpop.f32.mrf.mxu0 }
 0xf1e   : > { %2883 = vmatpush3.bf16.msra.mxu1 %v3004_v40 }
 0xf1f   : > { %2884 = vmatprep.subr.bf16.mxu1 %v3149_v15 }
 0xf22   : > { %2885 = vmatpush3.bf16.msra.mxu1 %v3005_v42 }
 0xf23   : > { %2886 = vmatprep.subr.bf16.mxu1 %v3149_v15 }
 0xf26   : > { %2887 = vmatpush3.bf16.msra.mxu1 %v3006_v43 }
 0xf27   : > { %2888 = vmatprep.subr.bf16.mxu1 %v3149_v15 }
 0xf2a   : > { %2889 = vmatpush3.bf16.msra.mxu1 %v3007_v44 }
 0xf2b   : > { %2890 = vmatprep.subr.bf16.mxu1 %v3149_v15 }
 0xf2e   : > { %2891 = vmatpush3.bf16.msra.mxu1 %v3008_v37 }
 0xf2f   : > { %2892 = vmatprep.subr.bf16.mxu1 %v3149_v15 }
 0xf32   : > { %2893 = vmatpush3.bf16.msra.mxu1 %v3009_v41 }
 0xf33   : > { %2894 = vmatprep.subr.bf16.mxu1 %v3149_v15  ;;  %v2612_v15 = vld [vmem:[%s627_s13] ss:$0 sm:$0xff] }
 0xf36   : > { %2895 = vmatpush3.bf16.msra.mxu1 %v3010_v60 }
 0xfd9   : > { %v2085_v20 = vpop.f32.mrf.mxu1 }
 0xfda   : > { %v2091_v21 = vadd.f32 %v2085_v20, %v1762_v46 }
 0xfdb   : > { %v2870_v22 = vpop.f32.mrf.mxu1 }
 0xfdc   : > { %v2098_v24 = vadd.f32 %v2607_v19, %v2091_v21 }
 0xfdd   : > { %v2088_v25 = vpop.f32.mrf.mxu1 }
 0xfde   : > { %v3592_v27 = vadd.f32 %v2098_v24, %v3369_v7  ;;  %v3002_v7 = vld [vmem:[%s3347_s12] sm:$0xff]  }
 0xfdf   : > { %v2871_v30 = vpop.f32.mrf.mxu1  ;;  %2875 = vmatpush3.bf16.msra.mxu0 %v3002_v7 }
 0xfe0   : > { %v2100_v31 = vsel %vm739_vm5, %v3592_v27, 0.0 }
 0xfe1   : > { %2101 = vadd.xlane.f32.xlu0 %v2100_v31 }
0x106a   : > { %v2102_v32 = vpop.xlane.xlu0 %2101 }
0x106b   : > { %v2103_v33 = vmul.f32 0.03125, %v2102_v32 }
0x106d   : > { %v2104_v34 = vsub.f32 %v3592_v27, %v2103_v33 }
0x106f   : > { %v2105_v35 = vmul.f32 %v2104_v34, %v2104_v34 }
0x1071   : > { %v2106_v36 = vsel %vm739_vm5, %v2105_v35, 0.0 }
0x1072   : > { %2107 = vadd.xlane.f32.xlu1 %v2106_v36 }
0x10fb   : > { %v2108_v45 = vpop.xlane.xlu1 %2107 }
0x10fc   : > { %v2109_v46 = vmul.f32 0.032258064, %v2108_v45 }
0x10fe   : > { %3031 = vrsqrt.f32 %v2109_v46  ;;  %vm2112_vm11 = vcmp.eq.f32.partialorder %v2109_v46, inf  ;;  %v2115_v49 = vand.u32 2147483648, %v2109_v46  ;;  %vm2114_vm12 = vcmp.eq.f32.partialorder %v2109_v46, 0.0 }
0x110b   : > { %v3032_v47 = vpop.eup %3031 }
0x110c   : > { %v2111_v48 = vmul.f32 %v3032_v47, %v2109_v46 }
0x110e   : > { %v2113_v50 = vsel %vm2112_vm11, %v2109_v46, %v2111_v48 }
0x110f   : > { %v2116_v51 = vsel %vm2114_vm12, %v2115_v49, %v2113_v50 }
0x1110   : > { %v2117_v52 = vadd.f32 1e-06, %v2116_v51 }
0x1112   : > { %3033 = vrcp.f32 %v2117_v52 }
0x111f   : > { %v3034_v55 = vpop.eup %3033 }
0x1120   : > { %v2119_v56 = vmul.f32 %v3034_v55, %v2104_v34 }
0x1122   : > { %v2124_v58 = vmul.f32 %v2123_v54, %v2119_v56 }
0x1124   : > { %v2129_v59 = vadd.f32 %v2128_v57, %v2124_v58 }
0x1126   : > { %v2130_v23 = vpack.c.bf16 %v2129_v59, %v2129_v59 }
0x1128   : > { %2877 = vmatmul.mubr.msk.bf16.vlgmr.msra.gmra.mxu0 %vm739_vm5, %v2130_v23 }
0x11e8   : > { %v2186_v28 = vpop.f32.mrf.mxu0 }
0x11e9   : > { %v2187_v61 = vadd.f32 %v2608_v26, %v2186_v28 }
0x11ea   : > { %v2878_v29 = vpop.f32.mrf.mxu0 }
0x11eb   : > { %v2192_v62 = vmax.f32 %v2187_v61, 0.0 }
0x11ec   : > { %v2189_v63 = vpop.f32.mrf.mxu0 }
0x11ed   : > { %v2193_v0 = vpack.c.bf16 %v2192_v62, %v2192_v62 }
0x11ee   : > { %v2879_v1 = vpop.f32.mrf.mxu0 }
0x11ef   : > { %2897 = vmatmul.mubr.bf16.vlgmr.msra.gmra.mxu1 %v2193_v0 }
0x12af   : > { %v2282_v2 = vpop.f32.mrf.mxu1 }
0x12b0   : > { %v2283_v3 = vadd.f32 %v2612_v15, %v2282_v2 }
0x12b1   : > { %v2898_v5 = vpop.f32.mrf.mxu1  ;;  %2292 = sbr.rel (%p2621_p6) target bundleno = 4791 (0x12b7), region = 80 }
0x12b2   : > { %v2288_v6 = vadd.f32 %v2283_v3, %v3592_v27 }
0x12b3   : > { %v2285_v8 = vpop.f32.mrf.mxu1 }
0x12b5   : > { %v2899_v9 = vpop.f32.mrf.mxu1 }
0x12b6   : > { %2293 = vst.msk [vmem:[%s3363_s18] sm:$0xff] %vm739_vm5, %v2288_v6 }
0x12b7 PF: > { %p2622_p7 = scmp.ne.s32.totalorder %s3129_s20, 1 }
0x12b8   : > { %s3749_s26 = sld [smem:[#allocation26_spill]] (!%p2622_p7) }
0x12b9   : > { %2297 = sbr.rel (%p2622_p7) target bundleno = 5125 (0x1405), region = 84  ;;  %s3750_s17 = sld [smem:[#allocation27_spill]] (!%p2622_p7) }
0x12be   : > { %v2300_v4 = vsel %vm739_vm5, %v2288_v6, 0.0  ;;  %v2623_v27 = vld [vmem:[%s3749_s26] ss:$0 sm:$0xff] }
0x12bf   : > { %2301 = vadd.xlane.f32.xlu0 %v2300_v4  ;;  %v2624_v31 = vld [vmem:[%s3750_s17] ss:$0 sm:$0xff] }
0x1348   : > { %v2302_v10 = vpop.xlane.xlu0 %2301 }
0x1349   : > { %v2303_v11 = vmul.f32 0.03125, %v2302_v10 }
0x134b   : > { %v2304_v12 = vsub.f32 %v2288_v6, %v2303_v11 }
0x134d   : > { %v2305_v13 = vmul.f32 %v2304_v12, %v2304_v12 }
0x134f   : > { %v2306_v14 = vsel %vm739_vm5, %v2305_v13, 0.0 }
0x1350   : > { %2307 = vadd.xlane.f32.xlu0 %v2306_v14 }
0x13d9   : > { %v2308_v16 = vpop.xlane.xlu0 %2307 }
0x13da   : > { %v2309_v17 = vmul.f32 0.032258064, %v2308_v16 }
0x13dc   : > { %3035 = vrsqrt.f32 %v2309_v17  ;;  %vm2312_vm13 = vcmp.eq.f32.partialorder %v2309_v17, inf  ;;  %v2315_v20 = vand.u32 2147483648, %v2309_v17  ;;  %vm2314_vm14 = vcmp.eq.f32.partialorder %v2309_v17, 0.0 }
0x13e9   : > { %v3036_v18 = vpop.eup %3035 }
0x13ea   : > { %v2311_v19 = vmul.f32 %v3036_v18, %v2309_v17 }
0x13ec   : > { %v2313_v21 = vsel %vm2312_vm13, %v2309_v17, %v2311_v19 }
0x13ed   : > { %v2316_v22 = vsel %vm2314_vm14, %v2315_v20, %v2313_v21 }
0x13ee   : > { %v2317_v24 = vadd.f32 1e-06, %v2316_v22 }
0x13f0   : > { %3037 = vrcp.f32 %v2317_v24 }
0x13fd   : > { %v3038_v25 = vpop.eup %3037 }
0x13fe   : > { %v2319_v30 = vmul.f32 %v3038_v25, %v2304_v12 }
0x1400   : > { %v2326_v32 = vmul.f32 %v2623_v27, %v2319_v30 }
0x1402   : > { %v2333_v33 = vadd.f32 %v2624_v31, %v2326_v32 }
0x1404   : > { %2334 = vst.msk [vmem:[%s3363_s18] sm:$0xff] %vm739_vm5, %v2333_v33 }
0x1405 PF: > { %s3751_s12 = sld [smem:[#allocation10_spill]]  ;;  %s2626_s15 = sshll.u32 %s3133_s21, 7 }
0x1406   : > { %s3753_s0 = sld [smem:[#allocation28_spill]]  ;;  %s2349_s3 = sshll.u32 %s3363_s18, 4  ;;  %s2350_s3 = int_to_ptr.vmem [resolvable:$true] %s2349_s3 }
0x1407   : > { %s3051_s4 = scalar_lea.vmem %s2350_s3, 128  ;;  %s3151_s6 = smov [#allocation5]  }
0x1408   : > { %p3052_p9 = scmp.ne.s32.totalorder %s2350_s3, %s3051_s4  ;;  %s3055_s14 = sshll.u32 %s3151_s6, 4  ;;  %s3056_s14 = int_to_ptr.vmem [resolvable:$false] %s3055_s14 }
0x1409   : > { %s3057_s19 = scalar_lea.vmem %s3056_s14, 256  ;;  %p3058_p12 = scmp.lt.s32.totalorder %s2350_s3, %s3056_s14 }
0x140a   : > { %p3053_p10 = pnand %p3052_p9, %p3279_p8  ;;  %p3059_p13 = scmp.lt.s32.totalorder %s3057_s19, %s3051_s4 }
0x140b   : > { %s3755_s2 = sand.u32 1, %s3751_s12  }
0x140c   : > { %s3754_s25 = smov %s3753_s0  ;;  %s2347_s13 = scalar_lea.hbm %s3753_s0, %s2626_s15 }
0x140d   : > { %s2336_s1 = scalar_lea.sflag [#allocation6], %s3755_s2  ;;  %p3054_p11 = pneg %p3053_p10 }
0x140e   : > { %p3060_p1 = por %p3059_p13, %p3058_p12 }
0x1410   : > { %p3061_p2 = pnand %p3060_p1, %p3054_p11 }
0x1412   : > { %3064 = shalt.err (!%p3061_p2)
}
0x1413   : > { %s3065_s21 = scalar_lea.hbm %s2347_s13, 128  ;;  %s3069_s30 = scalar_lea.hbm %s3754_s25, 256 }
0x1414   : > { %p3066_p3 = scmp.ne.s32.totalorder %s2347_s13, %s3065_s21  ;;  %p3070_p6 = scmp.lt.s32.totalorder %s2347_s13, %s3754_s25 }
0x1415   : > { %p3071_p7 = scmp.lt.s32.totalorder %s3069_s30, %s3065_s21 }
0x1416   : > { %p3067_p4 = pnand %p3066_p3, %p3279_p8 }
0x1417   : > { %p3072_p9 = por %p3071_p7, %p3070_p6 }
0x1418   : > { %p3068_p5 = pneg %p3067_p4 }
0x141a   : > { %p3073_p10 = pnand %p3072_p9, %p3068_p5 }
0x141c   : > { %3076 = shalt.err (!%p3073_p10)
}
0x141d   : > { %2902 = dma.vmem_to_hbm [thread:$0]  (%p3279_p8), %s2350_s3, 128, %s2347_s13, %s2336_s1  }
0x141e PF: > { %s3756_s26 = sld [smem:[#allocation14_spill]] }
0x141f   : > { %s3757_s28 = sld [smem:[#allocation9_spill]] }
0x1424   : > { %p2908_p11 = scmp.ge.s32.totalorder %s3756_s26, 2 }
0x1425   : > { %s2361_s17 = sand.u32 1, %s3757_s28  }
0x1426   : > { %p2905_p12 = pnand %p2908_p11, %p3289_p0  ;;  %s2362_s12 = scalar_lea.sflag [#allocation6], %s2361_s17 }
0x1428   : > { %p2906_p13 = pneg %p2905_p12 }
0x142a   : > { %3112 = dma.done.wait (%p2906_p13), %s2362_s12, 128  }
0x142b   : > { %3114 = vsyncadd (%p2906_p13), %s2362_s12, 4294967168  ;;  %s33_s24 = sadd.s32 1, %s3756_s26   ;;  %s3759_s18 = sld [smem:[#allocation10_spill]] }
0x142c   : > { %p30_p1 = scmp.ge.s32.totalorder %s33_s24, 6   ;;  %s3760_s19 = sld [smem:[#allocation11_spill]] }
0x142d   : > { %s3761_s0 = sld [smem:[#allocation19_spill]] }
0x142e   : > { %s3762_s20 = sld [smem:[#allocation12_spill]]  ;;  %32 = sbr.rel (!%p30_p1) target bundleno = 22 (0x16), region = 149 }
0x142f   : > { %s3763_s21 = sld [smem:[#allocation13_spill]] }
0x1430   : > { %s3764_s22 = sld [smem:[#allocation15_spill]] }
0x1431   : > { %s3765_s23 = sld [smem:[#allocation17_spill]] }
0x1433   :  { %2367 = vsyncpa [#allocation6], 1 }
0x1434   :  { %2369 = vsyncpa [#allocation6 + $0x1], 1 }

</bundles_post_ra>
